<compile_context>
chip_gen: v5e
topology: v5e:2x2
jax: 0.10.0
libtpu: 0.0.40
codegen_flags: <defaults>
</compile_context>

<pallas_src>
import functools

import jax
import jax.numpy as jnp
from jax import lax
from jax.experimental import pallas as pl
from jax.experimental.pallas import tpu as pltpu


def _round_up(a, b):
    return ((a + b - 1) // b) * b


def _cdiv(a, b):
    return (a + b - 1) // b


def _vmem_cap_bytes():
    # Physical VMEM per core (v5e/v6e: 128 MiB, v7x: 64 MiB).
    try:
        return int(pltpu.get_tpu_info().vmem_capacity_bytes)
    except Exception:
        return 64 << 20


def _vmem_budget():
    # Leave headroom for Mosaic internal scratch.
    return (_vmem_cap_bytes() * 7) // 8


def _num_tensorcores():
    try:
        kind = jax.devices()[0].device_kind.lower()
        if "7" in kind:          # v7x: 2 TensorCores per chip
            return 2
    except Exception:
        pass
    return 1


def _row_tiling(R):
    """Number of row tiles, row-tile height tm, and padded row count."""
    n_tiles = _num_tensorcores() if R >= 32 else 1
    n_tiles = max(n_tiles, _cdiv(R, 512))     # keep tm <= ~512 rows
    tm = _round_up(_cdiv(R, n_tiles), 16)
    return n_tiles, tm, tm * n_tiles


# ---------------------------------------------------------------------------
# RoIPool kernel: one grid step per RoI.
# ---------------------------------------------------------------------------
def _roi_pool_kernel(P, HB, meta_ref, x_ref, out_ref):
    r = pl.program_id(0)
    stride = 1 + 4 * P
    base = r * stride
    _, H, W, _ = x_ref.shape
    rows = lax.broadcasted_iota(jnp.int32, (HB, 1), 0)     # (HB, 1)
    cols = lax.broadcasted_iota(jnp.int32, (W, 1), 0)      # (W, 1)
    neg = jnp.asarray(jnp.finfo(x_ref.dtype).min, dtype=x_ref.dtype)

    def ph_body(ph, carry):
        hs = meta_ref[base + 1 + ph]
        he = meta_ref[base + 1 + P + ph]
        # Bounded dynamic slice along H (major dim -> pure address math): the
        # bin's in-bounds rows always fit inside an HB-row window starting at
        # min(hs, H - HB) for image-clipped RoIs.
        h0 = jnp.minimum(hs, H - HB)
        chunk = x_ref[0, pl.ds(h0, HB), :, :]              # (HB, W, C)
        row_m = ((rows + h0) >= hs) & ((rows + h0) < he)   # (HB, 1)
        # Row-masked partial max over the window -> (W, C) slab, ONCE per ph.
        slab = jnp.max(jnp.where(row_m[:, :, None], chunk, neg), axis=0)
        vals = []
        for pw in range(P):                                # small static loop
            ws = meta_ref[base + 1 + 2 * P + pw]
            we = meta_ref[base + 1 + 3 * P + pw]
            col_m = (cols >= ws) & (cols < we)             # (W, 1) lane-bcast
            mx = jnp.max(jnp.where(col_m, slab, neg), axis=0)      # (C,)
            empty = jnp.logical_or(he <= hs, we <= ws)     # torchvision: 0
            vals.append(jnp.where(empty, jnp.zeros_like(mx), mx))
        out_ref[0, ph] = jnp.stack(vals, axis=0).astype(out_ref.dtype)
        return carry

    lax.fori_loop(0, P, ph_body, 0)


def roi_pool(x_nhwc, meta_flat, R, R_pad, P):
    _, H, W, C = x_nhwc.shape
    stride = 1 + 4 * P
    HB = min(H, _cdiv(H, P) + 3)   # max rows any bin spans (clipped RoIs)
    kernel = functools.partial(_roi_pool_kernel, P, HB)

    esize = x_nhwc.dtype.itemsize
    feat_bytes = H * W * C * esize           # double-buffered by Pallas
    out_bytes = P * P * C * 2
    vmem_need = 2 * feat_bytes + 2 * out_bytes + (4 << 20)
    vmem_limit = int(min(max(vmem_need, 16 << 20), _vmem_budget()))

    return pl.pallas_call(
        kernel,
        out_shape=jax.ShapeDtypeStruct((R_pad, P, P, C), jnp.bfloat16),
        grid_spec=pltpu.PrefetchScalarGridSpec(
            num_scalar_prefetch=1,
            grid=(R,),
            in_specs=[
                pl.BlockSpec((1, H, W, C),
                             lambda r, meta: (meta[r * stride], 0, 0, 0)),
            ],
            out_specs=pl.BlockSpec((1, P, P, C),
                                   lambda r, meta: (r, 0, 0, 0)),
        ),
        compiler_params=pltpu.CompilerParams(
            dimension_semantics=("parallel",),   # RoI axis shards across TCs
            vmem_limit_bytes=vmem_limit),
    )(meta_flat, x_nhwc)


# ---------------------------------------------------------------------------
# Head kernel: fc7 = relu(pool @ Wc + bc) accumulated over K tiles, then one
# fused lane-dense projection for [cls_loc | score].
# ---------------------------------------------------------------------------
def _head_kernel(pool_ref, wc_ref, bc_ref, wo_ref, bo_ref, out_ref, acc_ref):
    k = pl.program_id(1)

    @pl.when(k == 0)
    def _():
        acc_ref[...] = jnp.zeros_like(acc_ref)

    acc_ref[...] += jnp.dot(pool_ref[...], wc_ref[...],
                            preferred_element_type=jnp.float32)

    @pl.when(k == pl.num_programs(1) - 1)
    def _():
        fc7 = jnp.maximum(acc_ref[...] + bc_ref[...], 0.0)      # f32 epilogue
        fc7 = fc7.astype(wo_ref.dtype)                           # bf16 on MXU
        out_ref[...] = (jnp.dot(fc7, wo_ref[...],
                                preferred_element_type=jnp.float32)
                        + bo_ref[...])


def roi_head_fc(pool_flat, packed, tm):
    """pool_flat: (R_pad, K) bf16 in (ph, pw, c) order; R_pad % tm == 0."""
    wc_p, bc_f, wo, bo = packed
    R_pad, K = pool_flat.shape
    K_pad, F = wc_p.shape
    N_pad = wo.shape[1]

    if K != K_pad:                        # rare fallback (K is 128-aligned at
        pool_flat = jnp.pad(pool_flat, ((0, 0), (0, K_pad - K)))  # real dims)

    budget = _vmem_budget()

    def head_vmem(tk):
        return (2 * tm * tk * 2 + 2 * tk * F * 2 + 2 * F * 4
                + 2 * F * N_pad * 2 + 2 * N_pad * 4
                + 2 * tm * N_pad * 4 + tm * F * 4 + (4 << 20))

    tk = 128                              # K_pad is always a multiple of 128
    for cand in (2048, 1024, 512, 256):
        if K_pad % cand == 0 and head_vmem(cand) <= budget:
            tk = cand
            break
    vmem_limit = int(min(max(head_vmem(tk), 16 << 20), budget))

    return pl.pallas_call(
        _head_kernel,
        out_shape=jax.ShapeDtypeStruct((R_pad, N_pad), jnp.float32),
        grid_spec=pltpu.PrefetchScalarGridSpec(
            num_scalar_prefetch=0,
            grid=(R_pad // tm, K_pad // tk),
            in_specs=[
                pl.BlockSpec((tm, tk), lambda i, k: (i, k)),      # pool tile
                pl.BlockSpec((tk, F), lambda i, k: (k, 0)),       # streamed Wc
                pl.BlockSpec((1, F), lambda i, k: (0, 0)),        # bc
                pl.BlockSpec((F, N_pad), lambda i, k: (0, 0)),    # [Wloc|Wsc]
                pl.BlockSpec((1, N_pad), lambda i, k: (0, 0)),    # fused bias
            ],
            out_specs=pl.BlockSpec((tm, N_pad), lambda i, k: (i, 0)),
            scratch_shapes=[pltpu.VMEM((tm, F), jnp.float32)],
        ),
        compiler_params=pltpu.CompilerParams(
            dimension_semantics=("parallel", "arbitrary"),
            vmem_limit_bytes=vmem_limit),
    )(pool_flat, wc_p, bc_f, wo, bo)


# ---------------------------------------------------------------------------
# Full forward (mirrors Resnet50RoIHead.forward)
# ---------------------------------------------------------------------------
def resnet50_roi_head_forward(packed_params, x_nchw, rois, roi_indices,
                              img_size, *, n_class, roi_size=4,
                              spatial_scale=1.0):
    B, C, Hf, Wf = x_nchw.shape
    R = rois.shape[0]
    assert R % B == 0, "rois must be batch-contiguous with equal counts"
    img_h, img_w = img_size
    P = roi_size

    # rois -> feature-map coords (x scaled by Wf/img_w, y by Hf/img_h)
    fx = jnp.stack(
        [rois[:, 0] / img_w * Wf,
         rois[:, 1] / img_h * Hf,
         rois[:, 2] / img_w * Wf,
         rois[:, 3] / img_h * Hf], axis=1)

    # torchvision RoIPool integer bin boundaries (plain-JAX scalar glue).
    c = jnp.floor(fx * spatial_scale + 0.5).astype(jnp.int32)   # round, >= 0
    x1, y1, x2, y2 = c[:, 0], c[:, 1], c[:, 2], c[:, 3]
    roi_w = jnp.maximum(x2 - x1 + 1, 1).astype(jnp.float32)
    roi_h = jnp.maximum(y2 - y1 + 1, 1).astype(jnp.float32)
    bin_h = roi_h / P
    bin_w = roi_w / P
    p = jnp.arange(P, dtype=jnp.float32)
    hstart = jnp.clip(jnp.floor(p[None] * bin_h[:, None]).astype(jnp.int32) + y1[:, None], 0, Hf)
    hend = jnp.clip(jnp.ceil((p[None] + 1.0) * bin_h[:, None]).astype(jnp.int32) + y1[:, None], 0, Hf)
    wstart = jnp.clip(jnp.floor(p[None] * bin_w[:, None]).astype(jnp.int32) + x1[:, None], 0, Wf)
    wend = jnp.clip(jnp.ceil((p[None] + 1.0) * bin_w[:, None]).astype(jnp.int32) + x1[:, None], 0, Wf)

    bidx = roi_indices.astype(jnp.int32)

    # Sort RoIs by batch index so consecutive grid steps reuse the feature-map
    # DMA; only the tiny head outputs are un-sorted at the end.
    order = jnp.argsort(bidx)
    inv = jnp.argsort(order)

    # Packed per-RoI metadata: [batch, hstart[P], hend[P], wstart[P], wend[P]]
    meta = jnp.concatenate(
        [bidx[:, None], hstart, hend, wstart, wend], axis=1).astype(jnp.int32)
    meta_flat = meta[order].reshape(-1)

    # NCHW -> NHWC + bf16 cast (halves feature DMA and the VMEM block).
    x_nhwc = jnp.transpose(x_nchw, (0, 2, 3, 1)).astype(jnp.bfloat16)

    _, tm, R_pad = _row_tiling(R)
    pool_sorted = roi_pool(x_nhwc, meta_flat, R, R_pad, P)  # (R_pad,P,P,C) bf16
    # Keep (ph, pw, c) flatten order -- Wc's K rows were permuted to match at
    # pack time, so no activation transpose is needed.
    pool_flat = pool_sorted.reshape(R_pad, P * P * C)

    out = roi_head_fc(pool_flat, packed_params, tm)          # (R_pad, N_pad)
    n_loc = n_class * 4
    locs = out[:R, :n_loc][inv]                              # original order
    scores = out[:R, n_loc:n_loc + n_class][inv]
    return (locs.reshape(B, -1, n_loc), scores.reshape(B, -1, n_class))


# ---------------------------------------------------------------------------
# Parameters: raw (PyTorch-layout) init + one-time packing (off the hot path).
# ---------------------------------------------------------------------------
def init_params(key, in_feat, n_class, fc7_dim=2048):
    """Raw params.  `in_feat` = C*P*P flattened in NCHW (c, ph, pw) order."""
    k1, k2, k3 = jax.random.split(key, 3)
    # Synthetic "classifier" (stand-in for resnet layer4 + avgpool).
    wc = jax.random.normal(k1, (in_feat, fc7_dim), jnp.float32) / jnp.sqrt(
        jnp.float32(in_feat))
    bc = jnp.zeros((fc7_dim,), jnp.float32)
    # cls_loc: normal_init(stddev=0.001), bias zero
    wl = jax.random.normal(k2, (fc7_dim, n_class * 4), jnp.float32) * 0.001
    bl = jnp.zeros((n_class * 4,), jnp.float32)
    # score: normal_init(stddev=0.01), bias zero
    wsc = jax.random.normal(k3, (fc7_dim, n_class), jnp.float32) * 0.01
    bsc = jnp.zeros((n_class,), jnp.float32)
    return (wc, bc, wl, bl, wsc, bsc)


def pack_params(params, C, P):
    """One-time packing: bf16 casts, permute Wc's K rows (c,ph,pw)->(ph,pw,c),
    pad K to a multiple of 128, fuse [cls_loc | score] into one lane-dense
    (128-padded) projection."""
    wc, bc, wl, bl, wsc, bsc = params
    K, F = wc.shape
    assert K == C * P * P and F % 128 == 0

    perm = jnp.arange(K).reshape(C, P, P).transpose(1, 2, 0).reshape(-1)
    wc = wc[perm]                               # rows now in (ph, pw, c) order

    K_pad = _round_up(K, 128)
    wc_p = jnp.zeros((K_pad, F), jnp.bfloat16).at[:K].set(wc.astype(jnp.bfloat16))
    bc_f = bc.reshape(1, F).astype(jnp.float32)

    n_loc, n_sc = wl.shape[1], wsc.shape[1]
    N = n_loc + n_sc
    N_pad = _round_up(N, 128)
    wo = jnp.zeros((F, N_pad), jnp.bfloat16)
    wo = wo.at[:, :n_loc].set(wl.astype(jnp.bfloat16))
    wo = wo.at[:, n_loc:N].set(wsc.astype(jnp.bfloat16))
    bo = jnp.zeros((1, N_pad), jnp.float32)
    bo = bo.at[:, :n_loc].set(bl.astype(jnp.float32))
    bo = bo.at[:, n_loc:N].set(bsc.astype(jnp.float32))
    return (wc_p, bc_f, wo, bo)


if __name__ == "__main__":
    B, C, Hf, Wf = 2, 8, 16, 16          # small stand-ins (real: C=1024, 38x38)
    roi_size = 4                          # real model: 14
    n_class = 21
    img_size = (32.0, 32.0)               # (img_h, img_w)
    rois_per_img = 4
    R = B * rois_per_img

    key = jax.random.PRNGKey(0)
    kx, kr, kp = jax.random.split(key, 3)

    x = jax.random.normal(kx, (B, C, Hf, Wf), jnp.float32)      # NCHW

    xy = jax.random.uniform(kr, (R, 4), minval=0.0, maxval=img_size[1])
    x1 = jnp.minimum(xy[:, 0], xy[:, 2])
    x2 = jnp.maximum(xy[:, 0], xy[:, 2])
    y1 = jnp.minimum(xy[:, 1], xy[:, 3])
    y2 = jnp.maximum(xy[:, 1], xy[:, 3])
    rois = jnp.stack([x1, y1, x2, y2], axis=1)                  # image coords
    roi_indices = jnp.repeat(jnp.arange(B, dtype=jnp.int32), rois_per_img)

    raw_params = init_params(kp, C * roi_size * roi_size, n_class)
    packed = pack_params(raw_params, C, roi_size)   # one-time, off hot path

    fwd = jax.jit(functools.partial(
        resnet50_roi_head_forward,
        n_class=n_class, roi_size=roi_size, spatial_scale=1.0))

    roi_cls_locs, roi_scores = fwd(packed, x, rois, roi_indices, img_size)
    jax.block_until_ready((roi_cls_locs, roi_scores))

    assert roi_cls_locs.shape == (B, rois_per_img, n_class * 4)
    assert roi_scores.shape == (B, rois_per_img, n_class)
    assert bool(jnp.isfinite(roi_cls_locs).all())
    assert bool(jnp.isfinite(roi_scores).all())
    print("KERNEL_OK")
</pallas_src>

<mosaic_0001>
module attributes {stable_mosaic.version = 11 : i64} {
  func.func @_head_kernel(%arg0: i32, %arg1: i32, %arg2: memref<16x128xbf16, #tpu.memory_space<vmem>>, %arg3: memref<128x2048xbf16, #tpu.memory_space<vmem>>, %arg4: memref<1x2048xf32, #tpu.memory_space<vmem>>, %arg5: memref<2048x128xbf16, #tpu.memory_space<vmem>>, %arg6: memref<1x128xf32, #tpu.memory_space<vmem>>, %arg7: memref<16x128xf32, #tpu.memory_space<vmem>>, %arg8: memref<16x2048xf32, #tpu.memory_space<vmem>>) attributes {dimension_semantics = [#tpu.dimension_semantics<parallel>, #tpu.dimension_semantics<arbitrary>], iteration_bounds = array<i64: 1, 1>, scalar_prefetch = 0 : i64, scratch_operands = 1 : i64, tpu.core_type = #tpu.core_type<tc>, window_params = [{transform_indices = @transform_0, window_bounds = array<i64: 16, 128>}, {transform_indices = @transform_1, window_bounds = array<i64: 128, 2048>}, {pipeline_mode = #tpu.pipeline_mode<synchronous>, transform_indices = @transform_2, window_bounds = array<i64: 1, 2048>}, {pipeline_mode = #tpu.pipeline_mode<synchronous>, transform_indices = @transform_3, window_bounds = array<i64: 2048, 128>}, {pipeline_mode = #tpu.pipeline_mode<synchronous>, transform_indices = @transform_4, window_bounds = array<i64: 1, 128>}, {transform_indices = @transform_5, window_bounds = array<i64: 16, 128>}]} {
    %c0_i32 = arith.constant 0 : i32
    %0 = arith.cmpi eq, %arg1, %c0_i32 : i32
    %1 = arith.extui %0 : i1 to i32
    %c0_i32_0 = arith.constant 0 : i32
    %2 = arith.cmpi ne, %1, %c0_i32_0 : i32
    scf.if %2 {
      %cst_10 = arith.constant 0.000000e+00 : f32
      %12 = vector.broadcast %cst_10 : f32 to vector<16x2048xf32>
      %c0_11 = arith.constant 0 : index
      %c0_12 = arith.constant 0 : index
      %13 = vector.load %arg8[%c0_11, %c0_12] : memref<16x2048xf32, #tpu.memory_space<vmem>>, vector<16x2048xf32>
      tpu.vector_store %arg8[%c0_11, %c0_12], %12 {strides = array<i32>} : memref<16x2048xf32, #tpu.memory_space<vmem>>, vector<16x2048xf32>,
    } else {
    }
    %c0 = arith.constant 0 : index
    %c0_1 = arith.constant 0 : index
    %3 = vector.load %arg8[%c0, %c0_1] : memref<16x2048xf32, #tpu.memory_space<vmem>>, vector<16x2048xf32>
    %c0_2 = arith.constant 0 : index
    %c0_3 = arith.constant 0 : index
    %4 = vector.load %arg2[%c0_2, %c0_3] : memref<16x128xbf16, #tpu.memory_space<vmem>>, vector<16x128xbf16>
    %c0_4 = arith.constant 0 : index
    %c0_5 = arith.constant 0 : index
    %5 = vector.load %arg3[%c0_4, %c0_5] : memref<128x2048xbf16, #tpu.memory_space<vmem>>, vector<128x2048xbf16>
    %cst = arith.constant dense<0.000000e+00> : vector<16x2048xf32>
    %6 = tpu.matmul %4, %5, %cst {dimension_numbers = #tpu.dot_dimension_numbers<[1], [0], [0], [1], [0, 0, 1, 1], [], []>} : vector<16x128xbf16>, vector<128x2048xbf16>, vector<16x2048xf32> -> vector<16x2048xf32>
    %7 = arith.addf %3, %6 : vector<16x2048xf32>
    %c0_6 = arith.constant 0 : index
    %c0_7 = arith.constant 0 : index
    %8 = vector.load %arg8[%c0_6, %c0_7] : memref<16x2048xf32, #tpu.memory_space<vmem>>, vector<16x2048xf32>
    tpu.vector_store %arg8[%c0_6, %c0_7], %7 {strides = array<i32>} : memref<16x2048xf32, #tpu.memory_space<vmem>>, vector<16x2048xf32>,
    %c0_i32_8 = arith.constant 0 : i32
    %9 = arith.cmpi eq, %arg1, %c0_i32_8 : i32
    %10 = arith.extui %9 : i1 to i32
    %c0_i32_9 = arith.constant 0 : i32
    %11 = arith.cmpi ne, %10, %c0_i32_9 : i32
    scf.if %11 {
      %c0_10 = arith.constant 0 : index
      %c0_11 = arith.constant 0 : index
      %12 = vector.load %arg8[%c0_10, %c0_11] : memref<16x2048xf32, #tpu.memory_space<vmem>>, vector<16x2048xf32>
      %c0_12 = arith.constant 0 : index
      %c0_13 = arith.constant 0 : index
      %13 = vector.load %arg4[%c0_12, %c0_13] : memref<1x2048xf32, #tpu.memory_space<vmem>>, vector<1x2048xf32>
      %14 = vector.broadcast %13 : vector<1x2048xf32> to vector<16x2048xf32>
      %15 = arith.addf %12, %14 : vector<16x2048xf32>
      %cst_14 = arith.constant 0.000000e+00 : f32
      %16 = vector.broadcast %cst_14 : f32 to vector<16x2048xf32>
      %17 = arith.maximumf %15, %16 : vector<16x2048xf32>
      %18 = arith.truncf %17 : vector<16x2048xf32> to vector<16x2048xbf16>
      %c0_15 = arith.constant 0 : index
      %c0_16 = arith.constant 0 : index
      %19 = vector.load %arg5[%c0_15, %c0_16] : memref<2048x128xbf16, #tpu.memory_space<vmem>>, vector<2048x128xbf16>
      %cst_17 = arith.constant dense<0.000000e+00> : vector<16x128xf32>
      %20 = tpu.matmul %18, %19, %cst_17 {dimension_numbers = #tpu.dot_dimension_numbers<[1], [0], [0], [1], [0, 0, 1, 1], [], []>} : vector<16x2048xbf16>, vector<2048x128xbf16>, vector<16x128xf32> -> vector<16x128xf32>
      %c0_18 = arith.constant 0 : index
      %c0_19 = arith.constant 0 : index
      %21 = vector.load %arg6[%c0_18, %c0_19] : memref<1x128xf32, #tpu.memory_space<vmem>>, vector<1x128xf32>
      %22 = vector.broadcast %21 : vector<1x128xf32> to vector<16x128xf32>
      %23 = arith.addf %20, %22 : vector<16x128xf32>
      %c0_20 = arith.constant 0 : index
      %c0_21 = arith.constant 0 : index
      %24 = vector.load %arg7[%c0_20, %c0_21] : memref<16x128xf32, #tpu.memory_space<vmem>>, vector<16x128xf32>
      tpu.vector_store %arg7[%c0_20, %c0_21], %23 {strides = array<i32>} : memref<16x128xf32, #tpu.memory_space<vmem>>, vector<16x128xf32>,
    } else {
    }
    return
  }
  func.func @transform_0(%arg0: i32, %arg1: i32) -> (i32, i32) {
    %c0_i32 = arith.constant 0 : i32
    return %arg0, %arg1 : i32, i32
  }
  func.func @transform_1(%arg0: i32, %arg1: i32) -> (i32, i32) {
    %c0_i32 = arith.constant 0 : i32
    %c0_i32_0 = arith.constant 0 : i32
    return %arg1, %c0_i32 : i32, i32
  }
  func.func @transform_2(%arg0: i32, %arg1: i32) -> (i32, i32) {
    %c0_i32 = arith.constant 0 : i32
    %c0_i32_0 = arith.constant 0 : i32
    %c0_i32_1 = arith.constant 0 : i32
    return %c0_i32, %c0_i32_0 : i32, i32
  }
  func.func @transform_3(%arg0: i32, %arg1: i32) -> (i32, i32) {
    %c0_i32 = arith.constant 0 : i32
    %c0_i32_0 = arith.constant 0 : i32
    %c0_i32_1 = arith.constant 0 : i32
    return %c0_i32, %c0_i32_0 : i32, i32
  }
  func.func @transform_4(%arg0: i32, %arg1: i32) -> (i32, i32) {
    %c0_i32 = arith.constant 0 : i32
    %c0_i32_0 = arith.constant 0 : i32
    %c0_i32_1 = arith.constant 0 : i32
    return %c0_i32, %c0_i32_0 : i32, i32
  }
  func.func @transform_5(%arg0: i32, %arg1: i32) -> (i32, i32) {
    %c0_i32 = arith.constant 0 : i32
    %c0_i32_0 = arith.constant 0 : i32
    return %arg0, %c0_i32 : i32, i32
  }
}

module attributes {stable_mosaic.version = 11 : i64} {
  func.func @_roi_pool_kernel(%arg0: i32, %arg1: memref<136xi32, #tpu.memory_space<smem>>, %arg2: memref<1x16x16x8xbf16, #tpu.memory_space<vmem>>, %arg3: memref<1x4x4x8xbf16, #tpu.memory_space<vmem>>) attributes {dimension_semantics = [#tpu.dimension_semantics<parallel>], iteration_bounds = array<i64: 8>, scalar_prefetch = 1 : i64, scratch_operands = 0 : i64, tpu.core_type = #tpu.core_type<tc>, window_params = [{transform_indices = @transform_0, window_bounds = array<i64: 1, 16, 16, 8>}, {transform_indices = @transform_1, window_bounds = array<i64: 1, 4, 4, 8>}]} {
    %c17_i32 = arith.constant 17 : i32
    %0 = arith.muli %arg0, %c17_i32 : i32
    %1 = tpu.iota {dimensions = array<i32: 0>} : vector<7x1xi32>
    %2 = tpu.iota {dimensions = array<i32: 0>} : vector<16x1xi32>
    %cst = arith.constant -3.389530e+38 : bf16
    %c0_i32 = arith.constant 0 : i32
    %c4_i32 = arith.constant 4 : i32
    %3 = arith.addi %c0_i32, %c4_i32 : i32
    %c1_i32 = arith.constant 1 : i32
    scf.for %arg4 = %c0_i32 to %3 step %c1_i32  : i32 {
      %c1_i32_1 = arith.constant 1 : i32
      %4 = arith.addi %0, %c1_i32_1 : i32
      %5 = arith.addi %4, %arg4 : i32
      %6 = arith.index_cast %5 : i32 to index
      %7 = memref.load %arg1[%6] : memref<136xi32, #tpu.memory_space<smem>>
      %c1_i32_2 = arith.constant 1 : i32
      %8 = arith.addi %0, %c1_i32_2 : i32
      %c4_i32_3 = arith.constant 4 : i32
      %9 = arith.addi %8, %c4_i32_3 : i32
      %10 = arith.addi %9, %arg4 : i32
      %11 = arith.index_cast %10 : i32 to index
      %12 = memref.load %arg1[%11] : memref<136xi32, #tpu.memory_space<smem>>
      %c9_i32 = arith.constant 9 : i32
      %13 = arith.minsi %7, %c9_i32 : i32
      %c0 = arith.constant 0 : index
      %14 = arith.index_cast %13 : i32 to index
      %c0_4 = arith.constant 0 : index
      %c0_5 = arith.constant 0 : index
      %15 = vector.load %arg2[%c0, %14, %c0_4, %c0_5] : memref<1x16x16x8xbf16, #tpu.memory_space<vmem>>, vector<1x7x16x8xbf16>
      %16 = vector.shape_cast %15 : vector<1x7x16x8xbf16> to vector<7x16x8xbf16>
      %17 = vector.broadcast %13 : i32 to vector<7x1xi32>
      %18 = arith.addi %1, %17 : vector<7x1xi32>
      %19 = vector.broadcast %7 : i32 to vector<7x1xi32>
      %20 = arith.cmpi sge, %18, %19 : vector<7x1xi32>
      %21 = vector.broadcast %13 : i32 to vector<7x1xi32>
      %22 = arith.addi %1, %21 : vector<7x1xi32>
      %23 = vector.broadcast %12 : i32 to vector<7x1xi32>
      %24 = arith.cmpi slt, %22, %23 : vector<7x1xi32>
      %25 = arith.andi %20, %24 : vector<7x1xi1>
      %26 = vector.shape_cast %25 : vector<7x1xi1> to vector<7x1x1xi1>
      %27 = vector.shape_cast %26 : vector<7x1x1xi1> to vector<7x1x1xi1>
      %28 = vector.broadcast %27 : vector<7x1x1xi1> to vector<7x16x8xi1>
      %29 = vector.broadcast %cst : bf16 to vector<7x16x8xbf16>
      %30 = arith.select %28, %16, %29 : vector<7x16x8xi1>, vector<7x16x8xbf16>
      %cst_6 = arith.constant dense<0xFF80> : vector<16x8xbf16>
      %31 = vector.multi_reduction <maximumf>, %30, %cst_6 [0] : vector<7x16x8xbf16> to vector<16x8xbf16>
      %c1_i32_7 = arith.constant 1 : i32
      %32 = arith.addi %0, %c1_i32_7 : i32
      %c8_i32 = arith.constant 8 : i32
      %33 = arith.addi %32, %c8_i32 : i32
      %c0_i32_8 = arith.constant 0 : i32
      %34 = arith.addi %33, %c0_i32_8 : i32
      %35 = arith.index_cast %34 : i32 to index
      %36 = memref.load %arg1[%35] : memref<136xi32, #tpu.memory_space<smem>>
      %c1_i32_9 = arith.constant 1 : i32
      %37 = arith.addi %0, %c1_i32_9 : i32
      %c12_i32 = arith.constant 12 : i32
      %38 = arith.addi %37, %c12_i32 : i32
      %c0_i32_10 = arith.constant 0 : i32
      %39 = arith.addi %38, %c0_i32_10 : i32
      %40 = arith.index_cast %39 : i32 to index
      %41 = memref.load %arg1[%40] : memref<136xi32, #tpu.memory_space<smem>>
      %42 = vector.broadcast %36 : i32 to vector<16x1xi32>
      %43 = arith.cmpi sge, %2, %42 : vector<16x1xi32>
      %44 = vector.broadcast %41 : i32 to vector<16x1xi32>
      %45 = arith.cmpi slt, %2, %44 : vector<16x1xi32>
      %46 = arith.andi %43, %45 : vector<16x1xi1>
      %47 = vector.shape_cast %46 : vector<16x1xi1> to vector<16x1xi1>
      %48 = vector.broadcast %47 : vector<16x1xi1> to vector<16x8xi1>
      %49 = vector.broadcast %cst : bf16 to vector<16x8xbf16>
      %50 = arith.select %48, %31, %49 : vector<16x8xi1>, vector<16x8xbf16>
      %cst_11 = arith.constant dense<0xFF80> : vector<8xbf16>
      %51 = vector.multi_reduction <maximumf>, %50, %cst_11 [0] : vector<16x8xbf16> to vector<8xbf16>
      %52 = arith.cmpi sle, %12, %7 : i32
      %53 = arith.cmpi sle, %41, %36 : i32
      %54 = arith.ori %52, %53 : i1
      %cst_12 = arith.constant 0.000000e+00 : bf16
      %55 = vector.broadcast %cst_12 : bf16 to vector<8xbf16>
      %56 = arith.select %54, %55, %51 : vector<8xbf16>
      %c1_i32_13 = arith.constant 1 : i32
      %57 = arith.addi %0, %c1_i32_13 : i32
      %c8_i32_14 = arith.constant 8 : i32
      %58 = arith.addi %57, %c8_i32_14 : i32
      %c1_i32_15 = arith.constant 1 : i32
      %59 = arith.addi %58, %c1_i32_15 : i32
      %60 = arith.index_cast %59 : i32 to index
      %61 = memref.load %arg1[%60] : memref<136xi32, #tpu.memory_space<smem>>
      %c1_i32_16 = arith.constant 1 : i32
      %62 = arith.addi %0, %c1_i32_16 : i32
      %c12_i32_17 = arith.constant 12 : i32
      %63 = arith.addi %62, %c12_i32_17 : i32
      %c1_i32_18 = arith.constant 1 : i32
      %64 = arith.addi %63, %c1_i32_18 : i32
      %65 = arith.index_cast %64 : i32 to index
      %66 = memref.load %arg1[%65] : memref<136xi32, #tpu.memory_space<smem>>
      %67 = vector.broadcast %61 : i32 to vector<16x1xi32>
      %68 = arith.cmpi sge, %2, %67 : vector<16x1xi32>
      %69 = vector.broadcast %66 : i32 to vector<16x1xi32>
      %70 = arith.cmpi slt, %2, %69 : vector<16x1xi32>
      %71 = arith.andi %68, %70 : vector<16x1xi1>
      %72 = vector.shape_cast %71 : vector<16x1xi1> to vector<16x1xi1>
      %73 = vector.broadcast %72 : vector<16x1xi1> to vector<16x8xi1>
      %74 = vector.broadcast %cst : bf16 to vector<16x8xbf16>
      %75 = arith.select %73, %31, %74 : vector<16x8xi1>, vector<16x8xbf16>
      %cst_19 = arith.constant dense<0xFF80> : vector<8xbf16>
      %76 = vector.multi_reduction <maximumf>, %75, %cst_19 [0] : vector<16x8xbf16> to vector<8xbf16>
      %77 = arith.cmpi sle, %12, %7 : i32
      %78 = arith.cmpi sle, %66, %61 : i32
      %79 = arith.ori %77, %78 : i1
      %cst_20 = arith.constant 0.000000e+00 : bf16
      %80 = vector.broadcast %cst_20 : bf16 to vector<8xbf16>
      %81 = arith.select %79, %80, %76 : vector<8xbf16>
      %c1_i32_21 = arith.constant 1 : i32
      %82 = arith.addi %0, %c1_i32_21 : i32
      %c8_i32_22 = arith.constant 8 : i32
      %83 = arith.addi %82, %c8_i32_22 : i32
      %c2_i32 = arith.constant 2 : i32
      %84 = arith.addi %83, %c2_i32 : i32
      %85 = arith.index_cast %84 : i32 to index
      %86 = memref.load %arg1[%85] : memref<136xi32, #tpu.memory_space<smem>>
      %c1_i32_23 = arith.constant 1 : i32
      %87 = arith.addi %0, %c1_i32_23 : i32
      %c12_i32_24 = arith.constant 12 : i32
      %88 = arith.addi %87, %c12_i32_24 : i32
      %c2_i32_25 = arith.constant 2 : i32
      %89 = arith.addi %88, %c2_i32_25 : i32
      %90 = arith.index_cast %89 : i32 to index
      %91 = memref.load %arg1[%90] : memref<136xi32, #tpu.memory_space<smem>>
      %92 = vector.broadcast %86 : i32 to vector<16x1xi32>
      %93 = arith.cmpi sge, %2, %92 : vector<16x1xi32>
      %94 = vector.broadcast %91 : i32 to vector<16x1xi32>
      %95 = arith.cmpi slt, %2, %94 : vector<16x1xi32>
      %96 = arith.andi %93, %95 : vector<16x1xi1>
      %97 = vector.shape_cast %96 : vector<16x1xi1> to vector<16x1xi1>
      %98 = vector.broadcast %97 : vector<16x1xi1> to vector<16x8xi1>
      %99 = vector.broadcast %cst : bf16 to vector<16x8xbf16>
      %100 = arith.select %98, %31, %99 : vector<16x8xi1>, vector<16x8xbf16>
      %cst_26 = arith.constant dense<0xFF80> : vector<8xbf16>
      %101 = vector.multi_reduction <maximumf>, %100, %cst_26 [0] : vector<16x8xbf16> to vector<8xbf16>
      %102 = arith.cmpi sle, %12, %7 : i32
      %103 = arith.cmpi sle, %91, %86 : i32
      %104 = arith.ori %102, %103 : i1
      %cst_27 = arith.constant 0.000000e+00 : bf16
      %105 = vector.broadcast %cst_27 : bf16 to vector<8xbf16>
      %106 = arith.select %104, %105, %101 : vector<8xbf16>
      %c1_i32_28 = arith.constant 1 : i32
      %107 = arith.addi %0, %c1_i32_28 : i32
      %c8_i32_29 = arith.constant 8 : i32
      %108 = arith.addi %107, %c8_i32_29 : i32
      %c3_i32 = arith.constant 3 : i32
      %109 = arith.addi %108, %c3_i32 : i32
      %110 = arith.index_cast %109 : i32 to index
      %111 = memref.load %arg1[%110] : memref<136xi32, #tpu.memory_space<smem>>
      %c1_i32_30 = arith.constant 1 : i32
      %112 = arith.addi %0, %c1_i32_30 : i32
      %c12_i32_31 = arith.constant 12 : i32
      %113 = arith.addi %112, %c12_i32_31 : i32
      %c3_i32_32 = arith.constant 3 : i32
      %114 = arith.addi %113, %c3_i32_32 : i32
      %115 = arith.index_cast %114 : i32 to index
      %116 = memref.load %arg1[%115] : memref<136xi32, #tpu.memory_space<smem>>
      %117 = vector.broadcast %111 : i32 to vector<16x1xi32>
      %118 = arith.cmpi sge, %2, %117 : vector<16x1xi32>
      %119 = vector.broadcast %116 : i32 to vector<16x1xi32>
      %120 = arith.cmpi slt, %2, %119 : vector<16x1xi32>
      %121 = arith.andi %118, %120 : vector<16x1xi1>
      %122 = vector.shape_cast %121 : vector<16x1xi1> to vector<16x1xi1>
      %123 = vector.broadcast %122 : vector<16x1xi1> to vector<16x8xi1>
      %124 = vector.broadcast %cst : bf16 to vector<16x8xbf16>
      %125 = arith.select %123, %31, %124 : vector<16x8xi1>, vector<16x8xbf16>
      %cst_33 = arith.constant dense<0xFF80> : vector<8xbf16>
      %126 = vector.multi_reduction <maximumf>, %125, %cst_33 [0] : vector<16x8xbf16> to vector<8xbf16>
      %127 = arith.cmpi sle, %12, %7 : i32
      %128 = arith.cmpi sle, %116, %111 : i32
      %129 = arith.ori %127, %128 : i1
      %cst_34 = arith.constant 0.000000e+00 : bf16
      %130 = vector.broadcast %cst_34 : bf16 to vector<8xbf16>
      %131 = arith.select %129, %130, %126 : vector<8xbf16>
      %132 = vector.shape_cast %56 : vector<8xbf16> to vector<1x8xbf16>
      %133 = vector.shape_cast %81 : vector<8xbf16> to vector<1x8xbf16>
      %134 = vector.shape_cast %106 : vector<8xbf16> to vector<1x8xbf16>
      %135 = vector.shape_cast %131 : vector<8xbf16> to vector<1x8xbf16>
      %136 = tpu.concatenate %132, %133, %134, %135 in 0 : vector<1x8xbf16>, vector<1x8xbf16>, vector<1x8xbf16>, vector<1x8xbf16> -> vector<4x8xbf16>
      %c0_35 = arith.constant 0 : index
      %137 = arith.index_cast %arg4 : i32 to index
      %c0_36 = arith.constant 0 : index
      %c0_37 = arith.constant 0 : index
      %138 = vector.load %arg3[%c0_35, %137, %c0_36, %c0_37] : memref<1x4x4x8xbf16, #tpu.memory_space<vmem>>, vector<1x1x4x8xbf16>
      %139 = vector.shape_cast %138 : vector<1x1x4x8xbf16> to vector<4x8xbf16>
      %140 = vector.shape_cast %136 : vector<4x8xbf16> to vector<1x1x4x8xbf16>
      tpu.vector_store %arg3[%c0_35, %137, %c0_36, %c0_37], %140 {strides = array<i32>} : memref<1x4x4x8xbf16, #tpu.memory_space<vmem>>, vector<1x1x4x8xbf16>,
    }
    %c4_i32_0 = arith.constant 4 : i32
    return
  }
  func.func @transform_0(%arg0: i32, %arg1: memref<136xi32, #tpu.memory_space<smem>>) -> (i32, i32, i32, i32) {
    %c17_i32 = arith.constant 17 : i32
    %0 = arith.muli %arg0, %c17_i32 : i32
    %1 = arith.index_cast %0 : i32 to index
    %2 = memref.load %arg1[%1] : memref<136xi32, #tpu.memory_space<smem>>
    %c0_i32 = arith.constant 0 : i32
    %c0_i32_0 = arith.constant 0 : i32
    %c0_i32_1 = arith.constant 0 : i32
    %c0_i32_2 = arith.constant 0 : i32
    return %2, %c0_i32, %c0_i32_0, %c0_i32_1 : i32, i32, i32, i32
  }
  func.func @transform_1(%arg0: i32, %arg1: memref<136xi32, #tpu.memory_space<smem>>) -> (i32, i32, i32, i32) {
    %c0_i32 = arith.constant 0 : i32
    %c0_i32_0 = arith.constant 0 : i32
    %c0_i32_1 = arith.constant 0 : i32
    %c0_i32_2 = arith.constant 0 : i32
    return %arg0, %c0_i32, %c0_i32_0, %c0_i32_1 : i32, i32, i32, i32
  }
}

</mosaic_0001>

<bundles_post_ra>
// kernel: resnet50_roi_head_forward.2
= control target key start
LH: loop header
LB: loop body
LE: loop exit
PB: predicated region body
PF: predicated region fallthrough
CT: control target
= control target key end

     0   :  { %s569_s12 = smov [#allocation3]   ;;  %s993_s0 = inlined_call_operand.vmem [shape: s32[136], index: 0, kind: input, shape index: {}]   ;;  %s994_s1 = inlined_call_operand.vmem [shape: bf16[2,16,16,8], index: 1, kind: input, shape index: {}]   ;;  %s995_s2 = inlined_call_operand.vmem [shape: bf16[16,4,4,8], index: 2, kind: output, shape index: {}]  }
   0x1   :  { %s8_s11 = sshll.u32 %s993_s0, 4  ;;  %s9_s11 = int_to_ptr.vmem [resolvable:$true] %s8_s11 }
   0x2   :  { %11 = dma.vmem_to_smem %s9_s11, 32, %s569_s12, [#allocation2] }
   0x3   :  { %559 = dma.done.wait [#allocation2], 32 }
   0x4   :  { %560 = vsyncadd [#allocation2], 4294967264 }
   0x5   :  { %14 = sfence }
   0x6   :  { %s589_s13 = smov 0  }
   0x7 LB: > { %s504_s14 = sadd.s32 4294967295, %s563_s13   ;;  %p508_p0 = scmp.ge.s32.totalorder %s563_s13, 1  ;;  %s563_s13 = sphi %s589_s13, %s20_s13  }
   0x8   : > { %p104_p1 = scmp.lt.s32.totalorder %s563_s13, 9 }
   0xa   : > { %p105_p2 = pnand %p508_p0, %p104_p1 }
   0xb   : > { %s597_s0 = smul.u32 (!%p105_p2), 17, %s504_s14  ;;  %p135_p3 = scmp.lt.s32.totalorder (!%p105_p2), %s504_s14, 15 }
   0xc   : > { %108 = sbr.rel (%p105_p2) target bundleno = 106 (0x6a), region = 24  ;;  %s615_s24 = smov (!%p105_p2), 0  }
   0xd   : > { %s127_s15 = sld [smem:[#allocation3 + %s597_s0]] (!%p105_p2) }
  0x11   : > { %v143_v0 = vlaneseq  ;;  %s1085_s14 = smov (!%p135_p3, %s504_s14), 15 }
  0x12   : > { %s519_s16 = sshll.u32 %s1085_s14, 3 }
  0x13   : > { %v600_v1 = vshrl.u32 %v143_v0, 7  ;;  %s608_s19 = scalar_lea.vmem %s995_s2, %s519_s16  ;;  %p128_p4 = scmp.lt.s32.totalorder %s127_s15, 1 }
  0x15   : > { %v603_v2 = vadd.s32 8, %v600_v1  ;;  %s1087_s15 = smov (!%p128_p4, %s127_s15), 1 }
  0x16   : > { %s518_s20 = sshll.u32 %s1087_s15, 7 }
  0x17   : > { %s613_s23 = scalar_lea.vmem %s994_s1, %s518_s20 }
  0x18 LB: >> { %s152_s25 = sadd.s32 1, %s597_s0  ;;  %s155_s26 = sadd.s32 5, %s597_s0  ;;  %v570_v17 = vmov 0   ;;  %v1016_v46 = vmov 0  ;;  %v1026_v57 = vmov 0  ;;  %v1030_v63 = vmov 0  ;;  %s567_s24 = sphi %s615_s24, %s151_s24  }
  0x19   : >> { %s153_s27 = sadd.s32 %s567_s24, %s152_s25  ;;  %s156_s28 = sadd.s32 %s567_s24, %s155_s26  ;;  %v1032_v0 = vmov 0 }
  0x1a   : >> { %s624_s29 = sld [smem:[#allocation3 + %s153_s27]]  ;;  %s270_s30 = sadd.s32 9, %s597_s0 }
  0x1b   : >> { %s627_s3 = sld [smem:[#allocation3 + %s156_s28]]  ;;  %s272_s4 = sadd.s32 13, %s597_s0 }
  0x1c   : >> { %s630_s5 = sld [smem:[#allocation3 + %s270_s30]]  ;;  %s309_s6 = sadd.s32 10, %s597_s0 }
  0x1d   : >> { %s633_s7 = sld [smem:[#allocation3 + %s272_s4]]  ;;  %s311_s8 = sadd.s32 14, %s597_s0 }
  0x1e   : >> { %s636_s9 = sld [smem:[#allocation3 + %s309_s6]]  ;;  %s347_s10 = sadd.s32 11, %s597_s0 }
  0x1f   : >> { %s639_s11 = sld [smem:[#allocation3 + %s311_s8]]  ;;  %s349_s12 = sadd.s32 15, %s597_s0 }
  0x20   : >> { %p158_p5 = scmp.lt.s32.totalorder %s624_s29, 9  ;;  %s643_s14 = sld [smem:[#allocation3 + %s347_s10]]  ;;  %v179_v4 = vstv %s624_s29 }
  0x21   : >> { %s646_s16 = sld [smem:[#allocation3 + %s349_s12]]  ;;  %s385_s17 = sadd.s32 12, %s597_s0  ;;  %v181_v5 = vstv %s627_s3 }
  0x22   : >> { %s159_s15 = scalar_select %p158_p5, %s624_s29, 9  ;;  %v274_v7 = vstv %s630_s5 }
  0x23   : >> { %s652_s20 = sld [smem:[#allocation3 + %s385_s17]]  ;;  %v277_v8 = vstv %s633_s7  ;;  %vm663_vm3 = vcmp.ge.s32.totalorder %v600_v1, %v274_v7  ;;  %vm676_vm6 = vcmp.ge.s32.totalorder %v603_v2, %v274_v7  ;;  %s387_s22 = sadd.s32 16, %s597_s0 }
  0x24   : >> { %s520_s18 = sshll.u32 %s159_s15, 3  ;;  %v177_v3 = vstv %s159_s15  ;;  %v313_v9 = vstv %s636_s9  ;;  %vm668_vm4 = vcmp.lt.s32.totalorder %v600_v1, %v277_v8  ;;  %vm681_vm7 = vcmp.lt.s32.totalorder %v603_v2, %v277_v8  ;;  %s799_s25 = sld [smem:[#allocation3 + %s387_s22]] }
  0x25   : >> { %v178_v6 = vadd.s32 %v177_v3, %v600_v1  ;;  %s655_s21 = scalar_lea.vmem %s613_s23, %s520_s18  ;;  %v316_v10 = vstv %s639_s11  ;;  %vm691_vm8 = vcmp.ge.s32.totalorder %v600_v1, %v313_v9  ;;  %vm724_vm14 = vcmp.ge.s32.totalorder %v603_v2, %v313_v9  ;;  %p302_p6 = scmp.le.s32.totalorder %s627_s3, %s624_s29 }
  0x26   : >> { %v163_v11 = vld [vmem:[%s655_s21] sm:$0xf]  ;;  %v164_v14 = vld [vmem:[%s655_s21 + $0x4] sm:$0xf]  ;;  %v165_v15 = vld [vmem:[%s655_s21 + $0x8] sm:$0xf]  ;;  %v351_v21 = vstv %s643_s14  ;;  %vm696_vm9 = vcmp.lt.s32.totalorder %v600_v1, %v316_v10  ;;  %vm729_vm15 = vcmp.lt.s32.totalorder %v603_v2, %v316_v10  ;;  %p303_p7 = scmp.le.s32.totalorder %s633_s7, %s630_s5  ;;  %p341_p8 = scmp.le.s32.totalorder %s639_s11, %s636_s9 }
  0x27   : >> { %vm180_vm0 = vcmp.ge.s32.totalorder %v178_v6, %v179_v4  ;;  %vm182_vm1 = vcmp.lt.s32.totalorder %v178_v6, %v181_v5  ;;  %v166_v16 = vld [vmem:[%s655_s21 + $0xc] sm:$0xf]  ;;  %v354_v22 = vstv %s646_s16  ;;  %v167_v23 = vld [vmem:[%s655_s21 + $0x10] sm:$0xf]  ;;  %v168_v24 = vld [vmem:[%s655_s21 + $0x14] sm:$0xf]  ;;  %vm756_vm5 = vcmp.ge.s32.totalorder %v600_v1, %v351_v21  ;;  %p379_p10 = scmp.le.s32.totalorder %s646_s16, %s643_s14 }
  0x28   : >> { %vm183_vm2 = vmand %vm180_vm0, %vm182_vm1  ;;  %v169_v25 = vld [vmem:[%s655_s21 + $0x18] sm:$0xf]  ;;  %v170_v32 = vld [vmem:[%s655_s21 + $0x1c] sm:$0xf]  ;;  %v1017_v46 = vsel %vm724_vm14, 4294967295, %v1016_v46  ;;  %v1027_v57 = vsel %vm756_vm5, 4294967295, %v1026_v57  ;;  %vm761_vm14 = vcmp.lt.s32.totalorder %v600_v1, %v354_v22  ;;  %p928_p9 = por %p303_p7, %p302_p6  ;;  %p949_p12 = por %p341_p8, %p302_p6 }
  0x29   : >> { %v184_v18 = vsel %vm183_vm2, 1, %v570_v17  ;;  %v171_v33 = vld [vmem:[%s655_s21 + $0x20] sm:$0xf]  ;;  %v172_v34 = vld [vmem:[%s655_s21 + $0x24] sm:$0xf]  ;;  %v389_v38 = vstv %s652_s20  ;;  %p962_p13 = por %p379_p10, %p302_p6  ;;  %s515_s3 = sshll.u32 %s567_s24, 1 }
  0x2a   : >> { %v185_v26 = vperm.slane %v184_v18, 0  ;;  %v186_v27 = vperm.slane %v184_v18, 1  ;;  %v187_v28 = vperm.slane %v184_v18, 2  ;;  %v188_v29 = vperm.slane %v184_v18, 3  ;;  %v173_v39 = vld [vmem:[%s655_s21 + $0x28] sm:$0xf]  ;;  %p417_p11 = scmp.le.s32.totalorder %s799_s25, %s652_s20  ;;  %s437_s7 = scalar_lea.vmem %s608_s19, %s515_s3 }
  0x2b   : >> { %v189_v35 = vperm.slane %v184_v18, 4  ;;  %v190_v36 = vperm.slane %v184_v18, 5  ;;  %v191_v37 = vperm.slane %v184_v18, 6  ;;  %v174_v40 = vld [vmem:[%s655_s21 + $0x2c] sm:$0xf]  ;;  %v392_v51 = vstv %s799_s25  ;;  %s151_s24 = sadd.s32 1, %s567_s24  }
  0x2c   : >> { %v175_v41 = vld [vmem:[%s655_s21 + $0x30] sm:$0xf]  ;;  %vm707_vm10 = vcmp.ne.s32.totalorder %v185_v26, 0  ;;  %vm711_vm11 = vcmp.ne.s32.totalorder %v186_v27, 0  ;;  %vm715_vm12 = vcmp.ne.s32.totalorder %v187_v28, 0  ;;  %vm719_vm13 = vcmp.ne.s32.totalorder %v188_v29, 0  ;;  %p972_p0 = por %p417_p11, %p302_p6 }
  0x2d   : >> { %v176_v48 = vld [vmem:[%s655_s21 + $0x34] sm:$0xf]  ;;  %vm734_vm0 = vcmp.ne.s32.totalorder %v189_v35, 0  ;;  %vm738_vm1 = vcmp.ne.s32.totalorder %v190_v36, 0  ;;  %vm742_vm2 = vcmp.ne.s32.totalorder %v191_v37, 0  ;;  %p148_p1 = scmp.ge.s32.totalorder %s151_s24, 4  }
  0x2e   : >> { %v213_v52 = vsel %vm707_vm10, %v163_v11, 4286578559  ;;  %v214_v53 = vsel %vm707_vm10, %v164_v14, 4286578559  ;;  %v215_v54 = vsel %vm711_vm11, %v165_v15, 4286578559  ;;  %vm772_vm10 = vcmp.ge.s32.totalorder %v603_v2, %v351_v21 }
  0x2f   : >> { %v216_v55 = vsel %vm711_vm11, %v166_v16, 4286578559  ;;  %v227_v56 = vunpack.c.l.bf16 %v213_v52  ;;  %v217_v59 = vsel %vm715_vm12, %v167_v23, 4286578559  ;;  %v218_v60 = vsel %vm715_vm12, %v168_v24, 4286578559  ;;  %vm319_vm12 = vmand %vm691_vm8, %vm696_vm9 }
  0x30   : >> { %v219_v61 = vsel %vm719_vm13, %v169_v25, 4286578559  ;;  %v228_v62 = vunpack.c.l.bf16 %v214_v53  ;;  %v1031_v63 = vsel %vm772_vm10, 4294967295, %v1030_v63  ;;  %vm777_vm11 = vcmp.lt.s32.totalorder %v603_v2, %v354_v22  ;;  %s305_s28 = scalar_select %p928_p9, 1, 0 }
  0x31   : >> { %v1033_v0 = vsel %vm777_vm11, 4294967295, %v1032_v0  ;;  %v220_v3 = vsel %vm719_vm13, %v170_v32, 4286578559  ;;  %v221_v4 = vsel %vm734_vm0, %v171_v33, 4286578559  ;;  %v229_v6 = vunpack.c.l.bf16 %v215_v54 }
  0x32   : >> { %v222_v5 = vsel %vm734_vm0, %v172_v34, 4286578559  ;;  %v223_v7 = vsel %vm738_vm1, %v173_v39, 4286578559  ;;  %v224_v8 = vsel %vm738_vm1, %v174_v40, 4286578559  ;;  %v230_v10 = vunpack.c.l.bf16 %v216_v55  ;;  %vm281_vm0 = vmand %vm676_vm6, %vm681_vm7 }
  0x33   : >> { %v225_v9 = vsel %vm742_vm2, %v175_v41, 4286578559  ;;  %v226_v11 = vsel %vm742_vm2, %v176_v48, 4286578559  ;;  %v231_v14 = vunpack.c.l.bf16 %v217_v59  ;;  %v232_v15 = vunpack.c.l.bf16 %v218_v60  ;;  %vm1041_vm6 = vmand %vm663_vm3, %vm668_vm4  ;;  %s343_s5 = scalar_select %p949_p12, 1, 0 }
  0x34   : >> { %v233_v16 = vunpack.c.l.bf16 %v219_v61  ;;  %v234_v17 = vunpack.c.l.bf16 %v220_v3  ;;  %v235_v18 = vunpack.c.l.bf16 %v221_v4  ;;  %v236_v21 = vunpack.c.l.bf16 %v222_v5  ;;  %vm822_vm7 = vmpackc.low %vm1041_vm6, %vm1041_vm6  ;;  %s381_s6 = scalar_select %p962_p13, 1, 0 }
  0x35   : >> { %v237_v22 = vunpack.c.l.bf16 %v223_v7  ;;  %v238_v23 = vunpack.c.l.bf16 %v224_v8  ;;  %v239_v24 = vunpack.c.l.bf16 %v225_v9  ;;  %v240_v25 = vunpack.c.l.bf16 %v226_v11  ;;  %s419_s29 = scalar_select %p972_p0, 1, 0 }
  0x36   : >> { %vm1034_vm13 = vcmask 64512   ;;  %vm1049_vm3 = vnez %v1017_v46  ;;  %vm1056_vm8 = vnez %v1033_v0  ;;  %vm1057_vm9 = vnez %v1031_v63 }
  0x37   : >> { %v242_v26 = vsel %vm1034_vm13, %v227_v56, -inf  ;;  %vm1035_vm1 = vmmov %vm1034_vm13  ;;  %v382_v49 = vstv %s381_s6 }
  0x38   : >> { %v243_v27 = vsel %vm1035_vm1, %v229_v6, -inf  ;;  %vm1036_vm2 = vmmov %vm1035_vm1  ;;  %v257_v39 = vsel %vm1035_vm1, %v232_v15, -inf }
  0x39   : >> { %v244_v28 = vsel %vm1036_vm2, %v231_v14, -inf  ;;  %vm1037_vm10 = vmmov %vm1035_vm1 }
  0x3a   : >> { %v246_v29 = vsel %vm1037_vm10, %v233_v16, -inf  ;;  %vm1038_vm11 = vmmov %vm1035_vm1  ;;  %v245_v33 = vmax.f32 %v242_v26, %v244_v28 }
  0x3b   : >> { %v248_v32 = vsel %vm1038_vm11, %v235_v18, -inf  ;;  %v247_v34 = vmax.f32 %v243_v27, %v246_v29  ;;  %vm1039_vm13 = vmmov %vm1035_vm1 }
  0x3c   : >> { %v250_v20 = vsel %vm1039_vm13, %v237_v22, -inf  ;;  %vm1040_vm5 = vmmov %vm1035_vm1  ;;  %v249_v12 = vmax.f32 %v245_v33, %v248_v32 }
  0x3d   : >> { %v252_v19 = vsel %vm1040_vm5, %v239_v24, -inf  ;;  %vm1044_vm10 = vmmov %vm1035_vm1  ;;  %v251_v13 = vmax.f32 %v247_v34, %v250_v20 }
  0x3e   : >> { %v255_v36 = vsel %vm1044_vm10, %v228_v62, -inf  ;;  %vm1045_vm11 = vmmov %vm1035_vm1  ;;  %vm1055_vm10 = vnez %v1027_v57  ;;  %v253_v30 = vmax.f32 %v249_v12, %v252_v19 }
  0x3f   : >> { %v256_v37 = vsel %vm1045_vm11, %v230_v10, -inf  ;;  %vm1046_vm2 = vmmov %vm1035_vm1  ;;  %v258_v42 = vmax.f32 %v255_v36, %v257_v39 }
  0x40   : >> { %v259_v40 = vsel %vm1046_vm2, %v234_v17, -inf  ;;  %vm830_vm13 = vmpackc.low %vm281_vm0, %vm281_vm0  ;;  %vm866_vm2 = vcmp.ge.s32.totalorder %v600_v1, %v389_v38  ;;  %v254_v52 = vmax.f32 %v253_v30, %v251_v13  ;;  %v344_v30 = vstv %s343_s5 }
  0x41   : >> { %vm320_vm4 = vmand %vm1049_vm3, %vm729_vm15  ;;  %v260_v43 = vmax.f32 %v256_v37, %v259_v40  ;;  %vm878_vm3 = vcmp.ge.s32.totalorder %v603_v2, %v389_v38  ;;  %v306_v40 = vstv %s305_s28 }
  0x42   : >> { %vm844_vm5 = vmpackc.low %vm319_vm12, %vm319_vm12  ;;  %v268_v59 = vpack.c.bf16 %v254_v52, %v254_v52 }
  0x43   : >> { %vm1052_vm0 = vmmov %vm1035_vm1 }
  0x44   : >> { %v261_v45 = vsel %vm1052_vm0, %v236_v21, -inf  ;;  %vm1053_vm6 = vmmov %vm1052_vm0  ;;  %v288_v60 = vsel %vm822_vm7, %v268_v59, 4286578559  ;;  %v327_v61 = vsel %vm844_vm5, %v268_v59, 4286578559  ;;  %vm1072_vm7 = vcmask 64512  }
  0x45   : >> { %v263_v46 = vsel %vm1053_vm6, %v238_v23, -inf  ;;  %vm1054_vm15 = vmmov %vm1052_vm0  ;;  %v262_v31 = vmax.f32 %v258_v42, %v261_v45  ;;  %vm393_vm0 = vcmp.lt.s32.totalorder %v600_v1, %v392_v51  ;;  %vm888_vm6 = vcmp.lt.s32.totalorder %v603_v2, %v392_v51 }
  0x46   : >> { %v265_v47 = vsel %vm1054_vm15, %v240_v25, -inf  ;;  %vm357_vm11 = vmand %vm1055_vm10, %vm761_vm14  ;;  %v264_v48 = vmax.f32 %v260_v43, %v263_v46  ;;  %v290_v63 = vunpack.c.l.bf16 %v288_v60  ;;  %v329_v0 = vunpack.c.l.bf16 %v327_v61 }
  0x47   : >> { %vm358_vm12 = vmand %vm1057_vm9, %vm1056_vm8  ;;  %v266_v53 = vmax.f32 %v262_v31, %v265_v47 }
  0x48   : >> { %vm859_vm1 = vmpackc.low %vm320_vm4, %vm320_vm4  ;;  %v292_v11 = vsel %vm1072_vm7, %v290_v63, -inf }
  0x49   : >> { %vm871_vm14 = vmpackc.low %vm357_vm11, %vm357_vm11  ;;  %v267_v58 = vmax.f32 %v266_v53, %v264_v48  ;;  %v420_v53 = vstv %s419_s29 }
  0x4a   : >> { %vm882_vm4 = vmpackc.low %vm358_vm12, %vm358_vm12  ;;  %v365_v62 = vsel %vm871_vm14, %v268_v59, 4286578559 }
  0x4b   : >> { %vm395_vm15 = vmand %vm866_vm2, %vm393_vm0  ;;  %v269_v38 = vpack.c.bf16 %v267_v58, %v267_v58  ;;  %v367_v3 = vunpack.c.l.bf16 %v365_v62  ;;  %vm424_vm0 = vsmask.f32 256 }
  0x4c   : >> { %vm396_vm10 = vmand %vm878_vm3, %vm888_vm6  ;;  %vm307_vm3 = vcmp.eq.s32.totalorder %v306_v40, 1  ;;  %vm345_vm6 = vcmp.eq.s32.totalorder %v344_v30, 1 }
  0x4d   : >> { %vm401_vm11 = vmpackc.low %vm395_vm15, %vm395_vm15  ;;  %v289_v6 = vsel %vm830_vm13, %v269_v38, 4286578559  ;;  %v328_v7 = vsel %vm859_vm1, %v269_v38, 4286578559  ;;  %v366_v8 = vsel %vm882_vm4, %v269_v38, 4286578559 }
  0x4e   : >> { %vm908_vm8 = vmpackc.low %vm396_vm10, %vm396_vm10  ;;  %v403_v5 = vsel %vm401_vm11, %v268_v59, 4286578559  ;;  %v291_v10 = vunpack.c.l.bf16 %v289_v6  ;;  %v330_v14 = vunpack.c.l.bf16 %v328_v7  ;;  %v368_v16 = vunpack.c.l.bf16 %v366_v8 }
  0x4f   : >> { %v405_v9 = vunpack.c.l.bf16 %v403_v5  ;;  %vm1073_vm5 = vmmov %vm1072_vm7  ;;  %v404_v18 = vsel %vm908_vm8, %v269_v38, 4286578559  ;;  %vm423_vm4 = vcmask 1040384   ;;  %vm432_vm15 = vcmask 1041408  }
  0x50   : >> { %v331_v15 = vsel %vm1073_vm5, %v329_v0, -inf  ;;  %vm1075_vm13 = vmmov %vm1073_vm5  ;;  %v406_v23 = vunpack.c.l.bf16 %v404_v18  ;;  %vm433_vm10 = vsmask.f32 1280  ;;  %vm383_vm11 = vcmp.eq.s32.totalorder %v382_v49, 1 }
  0x51   : >> { %v369_v17 = vsel %vm1075_vm13, %v367_v3, -inf  ;;  %vm1076_vm9 = vmmov %vm1073_vm5  ;;  %vm421_vm7 = vcmp.eq.s32.totalorder %v420_v53, 1  ;;  %vm438_vm13 = vcmask 58368  }
  0x52   : >> { %v293_v21 = vsel %vm1076_vm9, %v291_v10, -inf  ;;  %vm1077_vm12 = vmmov %vm1073_vm5 }
  0x53   : >> { %v332_v22 = vsel %vm1077_vm12, %v330_v14, -inf  ;;  %vm1078_vm1 = vmmov %vm1073_vm5  ;;  %v294_v25 = vmax.f32 %v292_v11, %v293_v21 }
  0x54   : >> { %v407_v24 = vsel %vm1078_vm1, %v405_v9, -inf  ;;  %v333_v26 = vmax.f32 %v331_v15, %v332_v22  ;;  %vm1079_vm2 = vmmov %vm1078_vm1 }
  0x55   : >> { %v370_v27 = vsel %vm1079_vm2, %v368_v16, -inf  ;;  %vm1081_vm14 = vmmov %vm1078_vm1  ;;  %v295_v32 = vrot.slane %v294_v25, 4 }
  0x56   : >> { %v371_v28 = vmax.f32 %v369_v17, %v370_v27  ;;  %v408_v29 = vsel %vm1081_vm14, %v406_v23, -inf  ;;  %v334_v33 = vrot.slane %v333_v26, 4  ;;  %vm425_vm8 = vmand %vm423_vm4, %vm424_vm0 }
  0x57   : >> { %v409_v34 = vmax.f32 %v407_v24, %v408_v29  ;;  %v296_v19 = vmax.f32 %v294_v25, %v295_v32  ;;  %vm434_vm5 = vmand %vm432_vm15, %vm433_vm10 }
  0x58   : >> { %v372_v20 = vrot.slane %v371_v28, 4  ;;  %v335_v35 = vmax.f32 %v333_v26, %v334_v33 }
  0x59   : >> { %v410_v36 = vrot.slane %v409_v34, 4  ;;  %v297_v39 = vrot.slane %v296_v19, 2 }
  0x5a   : >> { %v373_v37 = vmax.f32 %v371_v28, %v372_v20  ;;  %v336_v41 = vrot.slane %v335_v35, 2 }
  0x5b   : >> { %v411_v12 = vmax.f32 %v409_v34, %v410_v36  ;;  %v298_v42 = vmax.f32 %v296_v19, %v297_v39 }
  0x5c   : >> { %v374_v13 = vrot.slane %v373_v37, 2  ;;  %v337_v43 = vmax.f32 %v335_v35, %v336_v41 }
  0x5d   : >> { %v412_v44 = vrot.slane %v411_v12, 2  ;;  %v299_v46 = vrot.slane %v298_v42, 1 }
  0x5e   : >> { %v375_v45 = vmax.f32 %v373_v37, %v374_v13  ;;  %v338_v47 = vrot.slane %v337_v43, 1 }
  0x5f   : >> { %v413_v31 = vmax.f32 %v411_v12, %v412_v44  ;;  %v300_v50 = vmax.f32 %v298_v42, %v299_v46 }
  0x60   : >> { %v376_v48 = vrot.slane %v375_v45, 1  ;;  %v339_v51 = vmax.f32 %v337_v43, %v338_v47 }
  0x61   : >> { %v414_v52 = vrot.slane %v413_v31, 1  ;;  %v301_v55 = vpack.c.bf16 %v300_v50, %v300_v50 }
  0x62   : >> { %v377_v54 = vmax.f32 %v375_v45, %v376_v48  ;;  %v340_v56 = vpack.c.bf16 %v339_v51, %v339_v51 }
  0x63   : >> { %v415_v57 = vmax.f32 %v413_v31, %v414_v52  ;;  %v308_v59 = vsel %vm307_vm3, 0, %v301_v55 }
  0x64   : >> { %v378_v58 = vpack.c.bf16 %v377_v54, %v377_v54  ;;  %v346_v38 = vsel %vm345_vm6, 0, %v340_v56 }
  0x65   : >> { %v416_v60 = vpack.c.bf16 %v415_v57, %v415_v57  ;;  %v426_v62 = vsel %vm425_vm8, %v308_v59, %v346_v38  ;;  %150 = sbr.rel (!%p148_p1) target bundleno = 24 (0x18), region = 63 }
  0x66   : >> { %v384_v61 = vsel %vm383_vm11, 0, %v378_v58 }
  0x67   : >> { %v422_v63 = vsel %vm421_vm7, 0, %v416_v60  ;;  %v430_v0 = vsel %vm423_vm4, %v426_v62, %v384_v61 }
  0x68   : >> { %v435_v3 = vsel %vm434_vm5, %v430_v0, %v422_v63 }
  0x69   : >> { %439 = vst.msk [vmem:[%s437_s7] sm:$0x3] %vm438_vm13, %v435_v3 }
  0x6a PF: > { %s20_s13 = sadd.s32 1, %s563_s13  }
  0x6b   : > { %p17_p2 = scmp.ge.s32.totalorder %s20_s13, 10  }
  0x6d   :  { %19 = sbr.rel (!%p17_p2) target bundleno = 7 (0x7), region = 74 }

// kernel: resnet50_roi_head_forward.3
= control target key start
LH: loop header
LB: loop body
LE: loop exit
PB: predicated region body
PF: predicated region fallthrough
CT: control target
= control target key end

     0   :  { %10 = vsyncpa [#allocation4], 0  ;;  %s3893_s21 = smov [#allocation3]   ;;  %s3894_s23 = smov 64   ;;  %s4753_s0 = inlined_call_operand.vmem [shape: bf16[16,128], index: 0, kind: input, shape index: {}]   ;;  %s4754_s1 = inlined_call_operand.vmem [shape: bf16[128,2048], index: 1, kind: input, shape index: {}]   ;;  %s4755_s2 = inlined_call_operand.vmem [shape: f32[1,2048], index: 2, kind: input, shape index: {}]   ;;  %s4756_s3 = inlined_call_operand.hbm [shape: bf16[2048,128], index: 3, kind: input, shape index: {}]   ;;  %s4757_s4 = inlined_call_operand.vmem [shape: f32[1,128], index: 4, kind: input, shape index: {}]   ;;  %s4758_s5 = inlined_call_operand.vmem [shape: f32[16,128], index: 5, kind: output, shape index: {}]  }
   0x1   :  { %s21_s20 = sshll.u32 %s4756_s3, 4  ;;  %s23_s22 = sshll.u32 %s3893_s21, 4  ;;  %s22_s20 = int_to_ptr.hbm [resolvable:$true] %s21_s20  ;;  %s24_s22 = int_to_ptr.vmem [resolvable:$true] %s23_s22 }
   0x2   :  { %s3895_s24 = smov 4  }
   0x3   :  { %29 = dma.hbm_to_vmem [thread:$0]  %s22_s20, 16384, %s24_s22, [#allocation4], %s3894_s23, %s3894_s23, %s3895_s24  }
   0x4   :  { %3891 = dma.done.wait [#allocation4], 16384  }
   0x5   :  { %3892 = vsyncadd [#allocation4], 4294950912  ;;  %v3032_v0 = vld [vmem:[%s4754_s1 + $0x380] sm:$0xf]  ;;  %v3719_v2 = vld [vmem:[%s4754_s1 + $0x384] sm:$0xf] }
   0x6   :  { %v3727_v1 = vld [vmem:[%s4754_s1 + $0x3bc] sm:$0xf0]  ;;  %v3034_v4 = vld [vmem:[%s4754_s1 + $0x3c0] sm:$0xf0]  ;;  %v3040_v5 = vld [vmem:[%s4754_s1 + $0x388] sm:$0xf] }
   0x7   :  { %v3033_v3 = vor.u32 %v3727_v1, %v3032_v0  ;;  %v3728_v6 = vld [vmem:[%s4754_s1 + $0x3c4] sm:$0xf0]  ;;  %v3037_v7 = vor.u32 %v3719_v2, %v3034_v4  ;;  %v3720_v9 = vld [vmem:[%s4754_s1 + $0x38c] sm:$0xf]  ;;  %v2968_v11 = vld [vmem:[%s4754_s1 + $0x300] sm:$0xf] }
   0x8   :  { %v3041_v8 = vor.u32 %v3728_v6, %v3040_v5  ;;  %v3042_v10 = vld [vmem:[%s4754_s1 + $0x3c8] sm:$0xf0]  ;;  %v3711_v13 = vld [vmem:[%s4754_s1 + $0x33c] sm:$0xf0]  ;;  %v3703_v14 = vld [vmem:[%s4754_s1 + $0x304] sm:$0xf] }
   0x9   :  { %880 = vmatpush.bf16.msra.mxu0 %v3033_v3  ;;  %v3045_v12 = vor.u32 %v3720_v9, %v3042_v10  ;;  %v2970_v15 = vld [vmem:[%s4754_s1 + $0x340] sm:$0xf0]  ;;  %894 = vmatpush.bf16.msra.mxu1 %v3037_v7  ;;  %v2969_v16 = vor.u32 %v3711_v13, %v2968_v11  ;;  %v2976_v18 = vld [vmem:[%s4754_s1 + $0x308] sm:$0xf]  ;;  %v3704_v20 = vld [vmem:[%s4754_s1 + $0x30c] sm:$0xf] }
   0xa   :  { %908 = vmatpush.bf16.msra.mxu2 %v3041_v8  ;;  %v2973_v17 = vor.u32 %v3703_v14, %v2970_v15  ;;  %v3712_v19 = vld [vmem:[%s4754_s1 + $0x344] sm:$0xf0]  ;;  %v2978_v22 = vld [vmem:[%s4754_s1 + $0x348] sm:$0xf0]  ;;  %v2904_v23 = vld [vmem:[%s4754_s1 + $0x280] sm:$0xf] }
   0xb   :  { %922 = vmatpush.bf16.msra.mxu3 %v3045_v12  ;;  %v2977_v21 = vor.u32 %v3712_v19, %v2976_v18  ;;  %v3695_v24 = vld [vmem:[%s4754_s1 + $0x2bc] sm:$0xf0]  ;;  %v2981_v25 = vor.u32 %v3704_v20, %v2978_v22  ;;  %v3687_v26 = vld [vmem:[%s4754_s1 + $0x284] sm:$0xf]  ;;  %v2912_v28 = vld [vmem:[%s4754_s1 + $0x288] sm:$0xf] }
   0xc   :  { %v2906_v27 = vld [vmem:[%s4754_s1 + $0x2c0] sm:$0xf0]  ;;  %v2905_v29 = vor.u32 %v3695_v24, %v2904_v23  ;;  %v3696_v30 = vld [vmem:[%s4754_s1 + $0x2c4] sm:$0xf0]  ;;  %v3688_v31 = vld [vmem:[%s4754_s1 + $0x28c] sm:$0xf] }
   0xd   :  { %881 = vmatpush.bf16.msra.mxu0 %v2969_v16  ;;  %v2914_v32 = vld [vmem:[%s4754_s1 + $0x2c8] sm:$0xf0]  ;;  %895 = vmatpush.bf16.msra.mxu1 %v2973_v17  ;;  %v2909_v33 = vor.u32 %v3687_v26, %v2906_v27  ;;  %v2913_v34 = vor.u32 %v3696_v30, %v2912_v28  ;;  %v2840_v35 = vld [vmem:[%s4754_s1 + $0x200] sm:$0xf]  ;;  %v3671_v37 = vld [vmem:[%s4754_s1 + $0x204] sm:$0xf] }
   0xe   :  { %909 = vmatpush.bf16.msra.mxu2 %v2977_v21  ;;  %v3679_v36 = vld [vmem:[%s4754_s1 + $0x23c] sm:$0xf0]  ;;  %v2917_v38 = vor.u32 %v3688_v31, %v2914_v32  ;;  %v2842_v39 = vld [vmem:[%s4754_s1 + $0x240] sm:$0xf0]  ;;  %v2848_v40 = vld [vmem:[%s4754_s1 + $0x208] sm:$0xf] }
   0xf   :  { %923 = vmatpush.bf16.msra.mxu3 %v2981_v25  ;;  %v3680_v41 = vld [vmem:[%s4754_s1 + $0x244] sm:$0xf0]  ;;  %v3672_v42 = vld [vmem:[%s4754_s1 + $0x20c] sm:$0xf]  ;;  %v2841_v44 = vor.u32 %v3679_v36, %v2840_v35  ;;  %v2845_v45 = vor.u32 %v3671_v37, %v2842_v39  ;;  %v2776_v47 = vld [vmem:[%s4754_s1 + $0x180] sm:$0xf] }
  0x10   :  { %v2850_v43 = vld [vmem:[%s4754_s1 + $0x248] sm:$0xf0]  ;;  %v2849_v46 = vor.u32 %v3680_v41, %v2848_v40  ;;  %v3663_v48 = vld [vmem:[%s4754_s1 + $0x1bc] sm:$0xf0]  ;;  %v3655_v49 = vld [vmem:[%s4754_s1 + $0x184] sm:$0xf] }
  0x11   :  { %882 = vmatpush.bf16.msra.mxu0 %v2905_v29  ;;  %896 = vmatpush.bf16.msra.mxu1 %v2909_v33  ;;  %v2853_v50 = vor.u32 %v3672_v42, %v2850_v43  ;;  %v2778_v51 = vld [vmem:[%s4754_s1 + $0x1c0] sm:$0xf0]  ;;  %v2784_v52 = vld [vmem:[%s4754_s1 + $0x188] sm:$0xf]  ;;  %v3656_v54 = vld [vmem:[%s4754_s1 + $0x18c] sm:$0xf]  ;;  %v2777_v56 = vor.u32 %v3663_v48, %v2776_v47 }
  0x12   :  { %910 = vmatpush.bf16.msra.mxu2 %v2913_v34  ;;  %v3664_v53 = vld [vmem:[%s4754_s1 + $0x1c4] sm:$0xf0]  ;;  %v2786_v55 = vld [vmem:[%s4754_s1 + $0x1c8] sm:$0xf0]  ;;  %v2781_v57 = vor.u32 %v3655_v49, %v2778_v51  ;;  %v2712_v59 = vld [vmem:[%s4754_s1 + $0x100] sm:$0xf] }
  0x13   :  { %924 = vmatpush.bf16.msra.mxu3 %v2917_v38  ;;  %v2785_v58 = vor.u32 %v3664_v53, %v2784_v52  ;;  %v3647_v60 = vld [vmem:[%s4754_s1 + $0x13c] sm:$0xf0]  ;;  %v3639_v61 = vld [vmem:[%s4754_s1 + $0x104] sm:$0xf]  ;;  %v2789_v62 = vor.u32 %v3656_v54, %v2786_v55  ;;  %v2720_v0 = vld [vmem:[%s4754_s1 + $0x108] sm:$0xf] }
  0x14   :  { %v2714_v63 = vld [vmem:[%s4754_s1 + $0x140] sm:$0xf0]  ;;  %v3648_v1 = vld [vmem:[%s4754_s1 + $0x144] sm:$0xf0]  ;;  %v3640_v2 = vld [vmem:[%s4754_s1 + $0x10c] sm:$0xf]  ;;  %v2713_v4 = vor.u32 %v3647_v60, %v2712_v59 }
  0x15   :  { %883 = vmatpush.bf16.msra.mxu0 %v2841_v44  ;;  %897 = vmatpush.bf16.msra.mxu1 %v2845_v45  ;;  %v2722_v3 = vld [vmem:[%s4754_s1 + $0x148] sm:$0xf0]  ;;  %v2717_v5 = vor.u32 %v3639_v61, %v2714_v63  ;;  %v2721_v6 = vor.u32 %v3648_v1, %v2720_v0  ;;  %v2648_v7 = vld [vmem:[%s4754_s1 + $0x80] sm:$0xf]  ;;  %v3623_v9 = vld [vmem:[%s4754_s1 + $0x84] sm:$0xf] }
  0x16   :  { %911 = vmatpush.bf16.msra.mxu2 %v2849_v46  ;;  %v3631_v8 = vld [vmem:[%s4754_s1 + $0xbc] sm:$0xf0]  ;;  %v2725_v10 = vor.u32 %v3640_v2, %v2722_v3  ;;  %v2650_v11 = vld [vmem:[%s4754_s1 + $0xc0] sm:$0xf0]  ;;  %v2656_v12 = vld [vmem:[%s4754_s1 + $0x88] sm:$0xf] }
  0x17   :  { %925 = vmatpush.bf16.msra.mxu3 %v2853_v50  ;;  %v3632_v13 = vld [vmem:[%s4754_s1 + $0xc4] sm:$0xf0]  ;;  %v3624_v14 = vld [vmem:[%s4754_s1 + $0x8c] sm:$0xf]  ;;  %v2649_v16 = vor.u32 %v3631_v8, %v2648_v7  ;;  %v2584_v17 = vld [vmem:[%s4754_s1] sm:$0xf]  ;;  %v2653_v19 = vor.u32 %v3623_v9, %v2650_v11 }
  0x18   :  { %v2658_v15 = vld [vmem:[%s4754_s1 + $0xc8] sm:$0xf0]  ;;  %v3615_v18 = vld [vmem:[%s4754_s1 + $0x3c] sm:$0xf0]  ;;  %v2657_v20 = vor.u32 %v3632_v13, %v2656_v12  ;;  %v3607_v21 = vld [vmem:[%s4754_s1 + $0x4] sm:$0xf] }
  0x19   :  { %884 = vmatpush.bf16.msra.mxu0 %v2777_v56  ;;  %898 = vmatpush.bf16.msra.mxu1 %v2781_v57  ;;  %v2586_v22 = vld [vmem:[%s4754_s1 + $0x40] sm:$0xf0]  ;;  %v2592_v23 = vld [vmem:[%s4754_s1 + $0x8] sm:$0xf]  ;;  %v2661_v24 = vor.u32 %v3624_v14, %v2658_v15  ;;  %v3608_v26 = vld [vmem:[%s4754_s1 + $0xc] sm:$0xf]  ;;  %v2585_v31 = vor.u32 %v3615_v18, %v2584_v17 }
  0x1a   :  { %912 = vmatpush.bf16.msra.mxu2 %v2785_v58  ;;  %v3616_v25 = vld [vmem:[%s4754_s1 + $0x44] sm:$0xf0]  ;;  %v2594_v27 = vld [vmem:[%s4754_s1 + $0x48] sm:$0xf0]  ;;  %v3048_v28 = vld [vmem:[%s4754_s1 + $0x390] sm:$0xf]  ;;  %v2589_v35 = vor.u32 %v3607_v21, %v2586_v22 }
  0x1b   :  { %926 = vmatpush.bf16.msra.mxu3 %v2789_v62  ;;  %v3729_v29 = vld [vmem:[%s4754_s1 + $0x3cc] sm:$0xf0]  ;;  %v3721_v30 = vld [vmem:[%s4754_s1 + $0x394] sm:$0xf]  ;;  %v3056_v33 = vld [vmem:[%s4754_s1 + $0x398] sm:$0xf]  ;;  %v2593_v36 = vor.u32 %v3616_v25, %v2592_v23  ;;  %v2597_v39 = vor.u32 %v3608_v26, %v2594_v27 }
  0x1c   :  { %v3050_v32 = vld [vmem:[%s4754_s1 + $0x3d0] sm:$0xf0]  ;;  %v3730_v34 = vld [vmem:[%s4754_s1 + $0x3d4] sm:$0xf0]  ;;  %v3722_v37 = vld [vmem:[%s4754_s1 + $0x39c] sm:$0xf]  ;;  %v3049_v40 = vor.u32 %v3729_v29, %v3048_v28 }
  0x1d   :  { %885 = vmatpush.bf16.msra.mxu0 %v2713_v4  ;;  %899 = vmatpush.bf16.msra.mxu1 %v2717_v5  ;;  %v3058_v38 = vld [vmem:[%s4754_s1 + $0x3d8] sm:$0xf0]  ;;  %v3053_v41 = vor.u32 %v3721_v30, %v3050_v32  ;;  %v3057_v42 = vor.u32 %v3730_v34, %v3056_v33  ;;  %v2984_v43 = vld [vmem:[%s4754_s1 + $0x310] sm:$0xf]  ;;  %v3705_v45 = vld [vmem:[%s4754_s1 + $0x314] sm:$0xf] }
  0x1e   :  { %913 = vmatpush.bf16.msra.mxu2 %v2721_v6  ;;  %v3713_v44 = vld [vmem:[%s4754_s1 + $0x34c] sm:$0xf0]  ;;  %v3061_v46 = vor.u32 %v3722_v37, %v3058_v38  ;;  %v2986_v47 = vld [vmem:[%s4754_s1 + $0x350] sm:$0xf0]  ;;  %v2992_v48 = vld [vmem:[%s4754_s1 + $0x318] sm:$0xf] }
  0x1f   :  { %927 = vmatpush.bf16.msra.mxu3 %v2725_v10  ;;  %v3714_v49 = vld [vmem:[%s4754_s1 + $0x354] sm:$0xf0]  ;;  %v3706_v50 = vld [vmem:[%s4754_s1 + $0x31c] sm:$0xf]  ;;  %v4172_v52 = vld [vmem:[%s4753_s0] sm:$0xff]  ;;  %v2985_v53 = vor.u32 %v3713_v44, %v2984_v43  ;;  %v2989_v54 = vor.u32 %v3705_v45, %v2986_v47 }
  0x20   :  { %v2994_v51 = vld [vmem:[%s4754_s1 + $0x358] sm:$0xf0]  ;;  %v2993_v55 = vor.u32 %v3714_v49, %v2992_v48  ;;  %v2920_v56 = vld [vmem:[%s4754_s1 + $0x290] sm:$0xf]  ;;  %v3689_v58 = vld [vmem:[%s4754_s1 + $0x294] sm:$0xf] }
  0x21   :  { %886 = vmatpush.bf16.msra.mxu0 %v2649_v16  ;;  %900 = vmatpush.bf16.msra.mxu1 %v2653_v19  ;;  %v3697_v57 = vld [vmem:[%s4754_s1 + $0x2cc] sm:$0xf0]  ;;  %v2997_v59 = vor.u32 %v3706_v50, %v2994_v51  ;;  %v2922_v60 = vld [vmem:[%s4754_s1 + $0x2d0] sm:$0xf0]  ;;  %v2928_v61 = vld [vmem:[%s4754_s1 + $0x298] sm:$0xf] }
  0x22   :  { %914 = vmatpush.bf16.msra.mxu2 %v2657_v20  ;;  %v3698_v62 = vld [vmem:[%s4754_s1 + $0x2d4] sm:$0xf0]  ;;  %v3690_v63 = vld [vmem:[%s4754_s1 + $0x29c] sm:$0xf]  ;;  %v2921_v1 = vor.u32 %v3697_v57, %v2920_v56  ;;  %v2925_v2 = vor.u32 %v3689_v58, %v2922_v60  ;;  %v2856_v4 = vld [vmem:[%s4754_s1 + $0x210] sm:$0xf] }
  0x23   :  { %928 = vmatpush.bf16.msra.mxu3 %v2661_v24  ;;  %v2930_v0 = vld [vmem:[%s4754_s1 + $0x2d8] sm:$0xf0]  ;;  %v2929_v3 = vor.u32 %v3698_v62, %v2928_v61  ;;  %v3681_v5 = vld [vmem:[%s4754_s1 + $0x24c] sm:$0xf0]  ;;  %v3673_v6 = vld [vmem:[%s4754_s1 + $0x214] sm:$0xf] }
  0x24   :  { %v2933_v7 = vor.u32 %v3690_v63, %v2930_v0  ;;  %v2858_v8 = vld [vmem:[%s4754_s1 + $0x250] sm:$0xf0]  ;;  %v2864_v9 = vld [vmem:[%s4754_s1 + $0x218] sm:$0xf]  ;;  %v3674_v11 = vld [vmem:[%s4754_s1 + $0x21c] sm:$0xf]  ;;  %v2857_v13 = vor.u32 %v3681_v5, %v2856_v4 }
  0x25   :  { %887 = vmatpush.bf16.msra.mxu0 %v2585_v31  ;;  %901 = vmatpush.bf16.msra.mxu1 %v2589_v35  ;;  %v3682_v10 = vld [vmem:[%s4754_s1 + $0x254] sm:$0xf0]  ;;  %v2866_v12 = vld [vmem:[%s4754_s1 + $0x258] sm:$0xf0]  ;;  %v2861_v14 = vor.u32 %v3673_v6, %v2858_v8  ;;  %v2792_v16 = vld [vmem:[%s4754_s1 + $0x190] sm:$0xf] }
  0x26   :  { %915 = vmatpush.bf16.msra.mxu2 %v2593_v36  ;;  %v2865_v15 = vor.u32 %v3682_v10, %v2864_v9  ;;  %v3665_v17 = vld [vmem:[%s4754_s1 + $0x1cc] sm:$0xf0]  ;;  %v3657_v18 = vld [vmem:[%s4754_s1 + $0x194] sm:$0xf]  ;;  %v2869_v19 = vor.u32 %v3674_v11, %v2866_v12  ;;  %v2800_v21 = vld [vmem:[%s4754_s1 + $0x198] sm:$0xf] }
  0x27   :  { %929 = vmatpush.bf16.msra.mxu3 %v2597_v39  ;;  %v2794_v20 = vld [vmem:[%s4754_s1 + $0x1d0] sm:$0xf0]  ;;  %v3666_v22 = vld [vmem:[%s4754_s1 + $0x1d4] sm:$0xf0]  ;;  %v3658_v23 = vld [vmem:[%s4754_s1 + $0x19c] sm:$0xf]  ;;  %v2793_v25 = vor.u32 %v3665_v17, %v2792_v16 }
  0x28   :  { %888 = vmatmul.bf16.vlgmr.msra.gmra.mxu0 %v4172_v52  ;;  %902 = vmatmul.bf16.vlgmr.msra.gmra.mxu1 %v4172_v52  ;;  %v2802_v24 = vld [vmem:[%s4754_s1 + $0x1d8] sm:$0xf0]  ;;  %v2797_v26 = vor.u32 %v3657_v18, %v2794_v20  ;;  %v2801_v27 = vor.u32 %v3666_v22, %v2800_v21  ;;  %v2728_v28 = vld [vmem:[%s4754_s1 + $0x110] sm:$0xf]  ;;  %v3641_v30 = vld [vmem:[%s4754_s1 + $0x114] sm:$0xf] }
  0x29   :  { %936 = vmatpush.bf16.msrb.mxu0 %v3049_v40  ;;  %950 = vmatpush.bf16.msrb.mxu1 %v3053_v41  ;;  %v3649_v29 = vld [vmem:[%s4754_s1 + $0x14c] sm:$0xf0]  ;;  %v2805_v31 = vor.u32 %v3658_v23, %v2802_v24  ;;  %v2730_v32 = vld [vmem:[%s4754_s1 + $0x150] sm:$0xf0]  ;;  %v2736_v33 = vld [vmem:[%s4754_s1 + $0x118] sm:$0xf] }
  0x2a   :  { %964 = vmatpush.bf16.msrb.mxu2 %v3057_v42  ;;  %930 = vmatmul.bf16.vlgmr.msra.gmra.mxu3 %v4172_v52  ;;  %v3650_v34 = vld [vmem:[%s4754_s1 + $0x154] sm:$0xf0]  ;;  %v3642_v35 = vld [vmem:[%s4754_s1 + $0x11c] sm:$0xf]  ;;  %v2729_v37 = vor.u32 %v3649_v29, %v2728_v28  ;;  %v2733_v38 = vor.u32 %v3641_v30, %v2730_v32  ;;  %v2664_v40 = vld [vmem:[%s4754_s1 + $0x90] sm:$0xf] }
  0x2b   :  { %978 = vmatpush.bf16.msrb.mxu3 %v3061_v46  ;;  %916 = vmatmul.bf16.vlgmr.msra.gmra.mxu2 %v4172_v52  ;;  %v2738_v36 = vld [vmem:[%s4754_s1 + $0x158] sm:$0xf0]  ;;  %v2737_v39 = vor.u32 %v3650_v34, %v2736_v33  ;;  %v3633_v41 = vld [vmem:[%s4754_s1 + $0xcc] sm:$0xf0]  ;;  %v3625_v42 = vld [vmem:[%s4754_s1 + $0x94] sm:$0xf] }
  0x2c   :  { %v2741_v43 = vor.u32 %v3642_v35, %v2738_v36  ;;  %v2666_v44 = vld [vmem:[%s4754_s1 + $0xd0] sm:$0xf0]  ;;  %v2672_v45 = vld [vmem:[%s4754_s1 + $0x98] sm:$0xf]  ;;  %v3626_v47 = vld [vmem:[%s4754_s1 + $0x9c] sm:$0xf]  ;;  %v2665_v49 = vor.u32 %v3633_v41, %v2664_v40 }
  0x2d   :  { %937 = vmatpush.bf16.msrb.mxu0 %v2985_v53  ;;  %951 = vmatpush.bf16.msrb.mxu1 %v2989_v54  ;;  %v3634_v46 = vld [vmem:[%s4754_s1 + $0xd4] sm:$0xf0]  ;;  %v2674_v48 = vld [vmem:[%s4754_s1 + $0xd8] sm:$0xf0]  ;;  %v2600_v50 = vld [vmem:[%s4754_s1 + $0x10] sm:$0xf]  ;;  %v2669_v53 = vor.u32 %v3625_v42, %v2666_v44 }
  0x2e   :  { %965 = vmatpush.bf16.msrb.mxu2 %v2993_v55  ;;  %v3617_v51 = vld [vmem:[%s4754_s1 + $0x4c] sm:$0xf0]  ;;  %v2673_v54 = vor.u32 %v3634_v46, %v2672_v45  ;;  %v3609_v55 = vld [vmem:[%s4754_s1 + $0x14] sm:$0xf]  ;;  %v2608_v57 = vld [vmem:[%s4754_s1 + $0x18] sm:$0xf]  ;;  %v2677_v58 = vor.u32 %v3626_v47, %v2674_v48 }
  0x2f   :  { %979 = vmatpush.bf16.msrb.mxu3 %v2997_v59  ;;  %v2602_v56 = vld [vmem:[%s4754_s1 + $0x50] sm:$0xf0]  ;;  %v3618_v59 = vld [vmem:[%s4754_s1 + $0x54] sm:$0xf0]  ;;  %v3610_v60 = vld [vmem:[%s4754_s1 + $0x1c] sm:$0xf] }
  0x30   :  { %v2610_v61 = vld [vmem:[%s4754_s1 + $0x58] sm:$0xf0]  ;;  %v3064_v62 = vld [vmem:[%s4754_s1 + $0x3a0] sm:$0xf]  ;;  %v3723_v0 = vld [vmem:[%s4754_s1 + $0x3a4] sm:$0xf]  ;;  %v2605_v5 = vor.u32 %v3609_v55, %v2602_v56  ;;  %v2609_v6 = vor.u32 %v3618_v59, %v2608_v57 }
  0x31   :  { %938 = vmatpush.bf16.msrb.mxu0 %v2921_v1  ;;  %952 = vmatpush.bf16.msrb.mxu1 %v2925_v2  ;;  %v3731_v63 = vld [vmem:[%s4754_s1 + $0x3dc] sm:$0xf0]  ;;  %v2601_v1 = vor.u32 %v3617_v51, %v2600_v50  ;;  %v3066_v2 = vld [vmem:[%s4754_s1 + $0x3e0] sm:$0xf0]  ;;  %v3732_v4 = vld [vmem:[%s4754_s1 + $0x3e4] sm:$0xf0]  ;;  %v2613_v9 = vor.u32 %v3610_v60, %v2610_v61 }
  0x32   :  { %966 = vmatpush.bf16.msrb.mxu2 %v2929_v3  ;;  %v3072_v3 = vld [vmem:[%s4754_s1 + $0x3a8] sm:$0xf]  ;;  %v3074_v8 = vld [vmem:[%s4754_s1 + $0x3e8] sm:$0xf0]  ;;  %v3065_v10 = vor.u32 %v3731_v63, %v3064_v62  ;;  %v3069_v11 = vor.u32 %v3723_v0, %v3066_v2  ;;  %v3002_v17 = vld [vmem:[%s4754_s1 + $0x360] sm:$0xf0] }
  0x33   :  { %980 = vmatpush.bf16.msrb.mxu3 %v2933_v7  ;;  %v3724_v7 = vld [vmem:[%s4754_s1 + $0x3ac] sm:$0xf]  ;;  %v3073_v12 = vor.u32 %v3732_v4, %v3072_v3  ;;  %v3008_v18 = vld [vmem:[%s4754_s1 + $0x328] sm:$0xf]  ;;  %v2938_v29 = vld [vmem:[%s4754_s1 + $0x2e0] sm:$0xf0] }
  0x34   :  { %v3077_v16 = vor.u32 %v3724_v7, %v3074_v8  ;;  %v3708_v20 = vld [vmem:[%s4754_s1 + $0x32c] sm:$0xf]  ;;  %v2944_v30 = vld [vmem:[%s4754_s1 + $0x2a8] sm:$0xf]  ;;  %v2874_v41 = vld [vmem:[%s4754_s1 + $0x260] sm:$0xf0] }
  0x35   :  { %939 = vmatpush.bf16.msrb.mxu0 %v2857_v13  ;;  %953 = vmatpush.bf16.msrb.mxu1 %v2861_v14  ;;  %v3000_v13 = vld [vmem:[%s4754_s1 + $0x320] sm:$0xf]  ;;  %v3010_v21 = vld [vmem:[%s4754_s1 + $0x368] sm:$0xf0]  ;;  %v2880_v42 = vld [vmem:[%s4754_s1 + $0x228] sm:$0xf] }
  0x36   :  { %967 = vmatpush.bf16.msrb.mxu2 %v2865_v15  ;;  %v3715_v14 = vld [vmem:[%s4754_s1 + $0x35c] sm:$0xf0]  ;;  %v3707_v15 = vld [vmem:[%s4754_s1 + $0x324] sm:$0xf]  ;;  %v3013_v28 = vor.u32 %v3708_v20, %v3010_v21  ;;  %v3692_v32 = vld [vmem:[%s4754_s1 + $0x2ac] sm:$0xf] }
  0x37   :  { %981 = vmatpush.bf16.msrb.mxu3 %v2869_v19  ;;  %v3716_v19 = vld [vmem:[%s4754_s1 + $0x364] sm:$0xf0]  ;;  %v3001_v22 = vor.u32 %v3715_v14, %v3000_v13  ;;  %v3005_v23 = vor.u32 %v3707_v15, %v3002_v17  ;;  %v2946_v33 = vld [vmem:[%s4754_s1 + $0x2e8] sm:$0xf0]  ;;  %v3667_v50 = vld [vmem:[%s4754_s1 + $0x1dc] sm:$0xf0] }
  0x38   :  { %v3009_v24 = vor.u32 %v3716_v19, %v3008_v18  ;;  %v2949_v40 = vor.u32 %v3692_v32, %v2946_v33  ;;  %v3676_v44 = vld [vmem:[%s4754_s1 + $0x22c] sm:$0xf]  ;;  %v3659_v51 = vld [vmem:[%s4754_s1 + $0x1a4] sm:$0xf]  ;;  %v2816_v55 = vld [vmem:[%s4754_s1 + $0x1a8] sm:$0xf] }
  0x39   :  { %940 = vmatpush.bf16.msrb.mxu0 %v2793_v25  ;;  %954 = vmatpush.bf16.msrb.mxu1 %v2797_v26  ;;  %v2936_v25 = vld [vmem:[%s4754_s1 + $0x2a0] sm:$0xf]  ;;  %v2882_v45 = vld [vmem:[%s4754_s1 + $0x268] sm:$0xf0]  ;;  %v3668_v56 = vld [vmem:[%s4754_s1 + $0x1e4] sm:$0xf0] }
  0x3a   :  { %968 = vmatpush.bf16.msrb.mxu2 %v2801_v27  ;;  %v3699_v26 = vld [vmem:[%s4754_s1 + $0x2dc] sm:$0xf0]  ;;  %v3691_v27 = vld [vmem:[%s4754_s1 + $0x2a4] sm:$0xf]  ;;  %v3660_v57 = vld [vmem:[%s4754_s1 + $0x1ac] sm:$0xf]  ;;  %v2817_v61 = vor.u32 %v3668_v56, %v2816_v55 }
  0x3b   :  { %982 = vmatpush.bf16.msrb.mxu3 %v2805_v31  ;;  %v3700_v31 = vld [vmem:[%s4754_s1 + $0x2e4] sm:$0xf0]  ;;  %v2937_v34 = vor.u32 %v3699_v26, %v2936_v25  ;;  %v2941_v35 = vor.u32 %v3691_v27, %v2938_v29  ;;  %v2744_v62 = vld [vmem:[%s4754_s1 + $0x120] sm:$0xf]  ;;  %v3643_v0 = vld [vmem:[%s4754_s1 + $0x124] sm:$0xf] }
  0x3c   :  { %v2945_v36 = vor.u32 %v3700_v31, %v2944_v30  ;;  %v3651_v63 = vld [vmem:[%s4754_s1 + $0x15c] sm:$0xf0]  ;;  %v2746_v2 = vld [vmem:[%s4754_s1 + $0x160] sm:$0xf0]  ;;  %v2752_v3 = vld [vmem:[%s4754_s1 + $0x128] sm:$0xf] }
  0x3d   :  { %941 = vmatpush.bf16.msrb.mxu0 %v2729_v37  ;;  %955 = vmatpush.bf16.msrb.mxu1 %v2733_v38  ;;  %v2872_v37 = vld [vmem:[%s4754_s1 + $0x220] sm:$0xf]  ;;  %v3652_v4 = vld [vmem:[%s4754_s1 + $0x164] sm:$0xf0]  ;;  %v2745_v7 = vor.u32 %v3651_v63, %v2744_v62  ;;  %v2749_v8 = vor.u32 %v3643_v0, %v2746_v2  ;;  %v2682_v14 = vld [vmem:[%s4754_s1 + $0xe0] sm:$0xf0] }
  0x3e   :  { %969 = vmatpush.bf16.msrb.mxu2 %v2737_v39  ;;  %v3683_v38 = vld [vmem:[%s4754_s1 + $0x25c] sm:$0xf0]  ;;  %v3675_v39 = vld [vmem:[%s4754_s1 + $0x224] sm:$0xf]  ;;  %v2688_v15 = vld [vmem:[%s4754_s1 + $0xa8] sm:$0xf] }
  0x3f   :  { %983 = vmatpush.bf16.msrb.mxu3 %v2741_v43  ;;  %v3684_v43 = vld [vmem:[%s4754_s1 + $0x264] sm:$0xf0]  ;;  %v2873_v46 = vor.u32 %v3683_v38, %v2872_v37  ;;  %v2877_v47 = vor.u32 %v3675_v39, %v2874_v41  ;;  %v3628_v17 = vld [vmem:[%s4754_s1 + $0xac] sm:$0xf]  ;;  %v2616_v20 = vld [vmem:[%s4754_s1 + $0x20] sm:$0xf] }
  0x40   :  { %v2881_v48 = vor.u32 %v3684_v43, %v2880_v42  ;;  %v2690_v18 = vld [vmem:[%s4754_s1 + $0xe8] sm:$0xf0]  ;;  %v3619_v21 = vld [vmem:[%s4754_s1 + $0x5c] sm:$0xf0]  ;;  %v2618_v25 = vld [vmem:[%s4754_s1 + $0x60] sm:$0xf0] }
  0x41   :  { %942 = vmatpush.bf16.msrb.mxu0 %v2665_v49  ;;  %956 = vmatpush.bf16.msrb.mxu1 %v2669_v53  ;;  %v2808_v49 = vld [vmem:[%s4754_s1 + $0x1a0] sm:$0xf]  ;;  %v2885_v53 = vor.u32 %v3676_v44, %v2882_v45  ;;  %v2624_v26 = vld [vmem:[%s4754_s1 + $0x28] sm:$0xf]  ;;  %v2693_v27 = vor.u32 %v3628_v17, %v2690_v18  ;;  %v3612_v29 = vld [vmem:[%s4754_s1 + $0x2c] sm:$0xf] }
  0x42   :  { %970 = vmatpush.bf16.msrb.mxu2 %v2673_v54  ;;  %v2810_v54 = vld [vmem:[%s4754_s1 + $0x1e0] sm:$0xf0]  ;;  %v2809_v59 = vor.u32 %v3667_v50, %v2808_v49  ;;  %v2626_v30 = vld [vmem:[%s4754_s1 + $0x68] sm:$0xf0]  ;;  %v3080_v31 = vld [vmem:[%s4754_s1 + $0x3b0] sm:$0xf] }
  0x43   :  { %984 = vmatpush.bf16.msrb.mxu3 %v2677_v58  ;;  %v2818_v58 = vld [vmem:[%s4754_s1 + $0x1e8] sm:$0xf0]  ;;  %v2813_v60 = vor.u32 %v3659_v51, %v2810_v54  ;;  %v3733_v32 = vld [vmem:[%s4754_s1 + $0x3ec] sm:$0xf0]  ;;  %v3725_v33 = vld [vmem:[%s4754_s1 + $0x3b4] sm:$0xf]  ;;  %v2629_v42 = vor.u32 %v3612_v29, %v2626_v30 }
  0x44   :  { %v3734_v37 = vld [vmem:[%s4754_s1 + $0x3f4] sm:$0xf0]  ;;  %v3090_v41 = vld [vmem:[%s4754_s1 + $0x3f8] sm:$0xf0]  ;;  %v3081_v43 = vor.u32 %v3733_v32, %v3080_v31  ;;  %v3018_v50 = vld [vmem:[%s4754_s1 + $0x370] sm:$0xf0] }
  0x45   :  { %943 = vmatpush.bf16.msrb.mxu0 %v2601_v1  ;;  %957 = vmatpush.bf16.msrb.mxu1 %v2605_v5  ;;  %v2821_v1 = vor.u32 %v3660_v57, %v2818_v58  ;;  %v3644_v5 = vld [vmem:[%s4754_s1 + $0x12c] sm:$0xf]  ;;  %v3024_v51 = vld [vmem:[%s4754_s1 + $0x338] sm:$0xf]  ;;  %v3710_v54 = vld [vmem:[%s4754_s1 + $0x33c] sm:$0xf] }
  0x46   :  { %971 = vmatpush.bf16.msrb.mxu2 %v2609_v6  ;;  %v2754_v6 = vld [vmem:[%s4754_s1 + $0x168] sm:$0xf0]  ;;  %v3026_v55 = vld [vmem:[%s4754_s1 + $0x378] sm:$0xf0]  ;;  %v2954_v63 = vld [vmem:[%s4754_s1 + $0x2f0] sm:$0xf0] }
  0x47   :  { %985 = vmatpush.bf16.msrb.mxu3 %v2613_v9  ;;  %v2753_v9 = vor.u32 %v3652_v4, %v2752_v3  ;;  %v2757_v13 = vor.u32 %v3644_v5, %v2754_v6  ;;  %v3029_v62 = vor.u32 %v3710_v54, %v3026_v55  ;;  %v2960_v0 = vld [vmem:[%s4754_s1 + $0x2b8] sm:$0xf]  ;;  %v3694_v2 = vld [vmem:[%s4754_s1 + $0x2bc] sm:$0xf]  ;;  %v2760_v31 = vld [vmem:[%s4754_s1 + $0x130] sm:$0xf] }
  0x48   :  { %944 = vmatmul.bf16.vlgmr.msrb.gmra.mxu0 %v4172_v52  ;;  %958 = vmatmul.bf16.vlgmr.msrb.gmra.mxu1 %v4172_v52  ;;  %v2962_v3 = vld [vmem:[%s4754_s1 + $0x2f8] sm:$0xf0]  ;;  %v3653_v32 = vld [vmem:[%s4754_s1 + $0x16c] sm:$0xf0] }
  0x49   :  { %992 = vmatpush.bf16.msra.mxu0 %v3065_v10  ;;  %1006 = vmatpush.bf16.msra.mxu1 %v3069_v11  ;;  %v2680_v10 = vld [vmem:[%s4754_s1 + $0xa0] sm:$0xf] }
  0x4a   :  { %1020 = vmatpush.bf16.msra.mxu2 %v3073_v12  ;;  %986 = vmatmul.bf16.vlgmr.msrb.gmra.mxu3 %v4172_v52  ;;  %v3635_v11 = vld [vmem:[%s4754_s1 + $0xdc] sm:$0xf0]  ;;  %v3627_v12 = vld [vmem:[%s4754_s1 + $0xa4] sm:$0xf] }
  0x4b   :  { %1034 = vmatpush.bf16.msra.mxu3 %v3077_v16  ;;  %972 = vmatmul.bf16.vlgmr.msrb.gmra.mxu2 %v4172_v52  ;;  %v3636_v16 = vld [vmem:[%s4754_s1 + $0xe4] sm:$0xf0]  ;;  %v2681_v19 = vor.u32 %v3635_v11, %v2680_v10  ;;  %v2965_v10 = vor.u32 %v3694_v2, %v2962_v3  ;;  %v2890_v11 = vld [vmem:[%s4754_s1 + $0x270] sm:$0xf0] }
  0x4d   :  { %993 = vmatpush.bf16.msra.mxu0 %v3001_v22  ;;  %1007 = vmatpush.bf16.msra.mxu1 %v3005_v23  ;;  %v2685_v22 = vor.u32 %v3627_v12, %v2682_v14  ;;  %v2689_v23 = vor.u32 %v3636_v16, %v2688_v15  ;;  %v2896_v12 = vld [vmem:[%s4754_s1 + $0x238] sm:$0xf]  ;;  %v3678_v14 = vld [vmem:[%s4754_s1 + $0x23c] sm:$0xf] }
  0x4e   :  { %1021 = vmatpush.bf16.msra.mxu2 %v3009_v24  ;;  %v3611_v24 = vld [vmem:[%s4754_s1 + $0x24] sm:$0xf]  ;;  %v2898_v15 = vld [vmem:[%s4754_s1 + $0x278] sm:$0xf0] }
  0x4f   :  { %1035 = vmatpush.bf16.msra.mxu3 %v3013_v28  ;;  %v3620_v28 = vld [vmem:[%s4754_s1 + $0x64] sm:$0xf0]  ;;  %v2621_v38 = vor.u32 %v3611_v24, %v2618_v25  ;;  %v2832_v24 = vld [vmem:[%s4754_s1 + $0x1b8] sm:$0xf] }
  0x50   :  { %v2625_v39 = vor.u32 %v3620_v28, %v2624_v26  ;;  %v3670_v25 = vld [vmem:[%s4754_s1 + $0x1f4] sm:$0xf0]  ;;  %v3662_v26 = vld [vmem:[%s4754_s1 + $0x1bc] sm:$0xf] }
  0x51   :  { %994 = vmatpush.bf16.msra.mxu0 %v2937_v34  ;;  %1008 = vmatpush.bf16.msra.mxu1 %v2941_v35  ;;  %v2617_v34 = vor.u32 %v3619_v21, %v2616_v20  ;;  %v3082_v35 = vld [vmem:[%s4754_s1 + $0x3f0] sm:$0xf0]  ;;  %v3669_v20 = vld [vmem:[%s4754_s1 + $0x1ec] sm:$0xf0]  ;;  %v2833_v30 = vor.u32 %v3670_v25, %v2832_v24  ;;  %v3762_v24 = vld [vmem:[#allocation3 + $0xd8] sm:$0xff] }
  0x52   :  { %1022 = vmatpush.bf16.msra.mxu2 %v2945_v36  ;;  %v3088_v36 = vld [vmem:[%s4754_s1 + $0x3b8] sm:$0xf]  ;;  %v3085_v44 = vor.u32 %v3725_v33, %v3082_v35  ;;  %v3661_v21 = vld [vmem:[%s4754_s1 + $0x1b4] sm:$0xf] }
  0x53   :  { %1036 = vmatpush.bf16.msra.mxu3 %v2949_v40  ;;  %v3726_v40 = vld [vmem:[%s4754_s1 + $0x3bc] sm:$0xf]  ;;  %v3089_v45 = vor.u32 %v3734_v37, %v3088_v36  ;;  %v3645_v33 = vld [vmem:[%s4754_s1 + $0x134] sm:$0xf]  ;;  %v2768_v36 = vld [vmem:[%s4754_s1 + $0x138] sm:$0xf] }
  0x54   :  { %v3093_v49 = vor.u32 %v3726_v40, %v3090_v41  ;;  %v2762_v35 = vld [vmem:[%s4754_s1 + $0x170] sm:$0xf0]  ;;  %v3654_v37 = vld [vmem:[%s4754_s1 + $0x174] sm:$0xf0]  ;;  %v2761_v40 = vor.u32 %v3653_v32, %v2760_v31  ;;  %v3735_v31 = vld [vmem:[#allocation3] sm:$0xff] }
  0x55   :  { %995 = vmatpush.bf16.msra.mxu0 %v2873_v46  ;;  %1009 = vmatpush.bf16.msra.mxu1 %v2877_v47  ;;  %v3016_v46 = vld [vmem:[%s4754_s1 + $0x330] sm:$0xf]  ;;  %v2765_v41 = vor.u32 %v3645_v33, %v2762_v35  ;;  %v3760_v32 = vld [vmem:[#allocation3 + $0xc8] sm:$0xff]  ;;  %v3743_v33 = vld [vmem:[#allocation3 + $0x40] sm:$0xff] }
  0x56   :  { %1023 = vmatpush.bf16.msra.mxu2 %v2881_v48  ;;  %v3717_v47 = vld [vmem:[%s4754_s1 + $0x36c] sm:$0xf0]  ;;  %v3709_v48 = vld [vmem:[%s4754_s1 + $0x334] sm:$0xf]  ;;  %v3782_v35 = vld [vmem:[#allocation3 + $0x178] sm:$0xff] }
  0x57   :  { %1037 = vmatpush.bf16.msra.mxu3 %v2885_v53  ;;  %v3718_v53 = vld [vmem:[%s4754_s1 + $0x374] sm:$0xf0]  ;;  %v3017_v56 = vor.u32 %v3717_v47, %v3016_v46  ;;  %v3021_v57 = vor.u32 %v3709_v48, %v3018_v50  ;;  %v2698_v47 = vld [vmem:[%s4754_s1 + $0xf0] sm:$0xf0]  ;;  %v3630_v50 = vld [vmem:[%s4754_s1 + $0xbc] sm:$0xf] }
  0x58   :  { %v3025_v58 = vor.u32 %v3718_v53, %v3024_v51  ;;  %v2704_v48 = vld [vmem:[%s4754_s1 + $0xb8] sm:$0xf]  ;;  %v2706_v51 = vld [vmem:[%s4754_s1 + $0xf8] sm:$0xf0]  ;;  %v3745_v25 = vld [vmem:[#allocation3 + $0x50] sm:$0xff] }
  0x59   :  { %996 = vmatpush.bf16.msra.mxu0 %v2809_v59  ;;  %1010 = vmatpush.bf16.msra.mxu1 %v2813_v60  ;;  %v2952_v59 = vld [vmem:[%s4754_s1 + $0x2b0] sm:$0xf] }
  0x5a   :  { %1024 = vmatpush.bf16.msra.mxu2 %v2817_v61  ;;  %v3701_v60 = vld [vmem:[%s4754_s1 + $0x2ec] sm:$0xf0]  ;;  %v3693_v61 = vld [vmem:[%s4754_s1 + $0x2b4] sm:$0xf] }
  0x5b   :  { %1038 = vmatpush.bf16.msra.mxu3 %v2821_v1  ;;  %v3702_v1 = vld [vmem:[%s4754_s1 + $0x2f4] sm:$0xf0]  ;;  %v2953_v4 = vor.u32 %v3701_v60, %v2952_v59  ;;  %v2957_v5 = vor.u32 %v3693_v61, %v2954_v63  ;;  %v2709_v59 = vor.u32 %v3630_v50, %v2706_v51  ;;  %v2634_v60 = vld [vmem:[%s4754_s1 + $0x70] sm:$0xf0]  ;;  %v3614_v63 = vld [vmem:[%s4754_s1 + $0x3c] sm:$0xf] }
  0x5c   :  { %v2961_v6 = vor.u32 %v3702_v1, %v2960_v0  ;;  %v2640_v61 = vld [vmem:[%s4754_s1 + $0x38] sm:$0xf]  ;;  %v2642_v0 = vld [vmem:[%s4754_s1 + $0x78] sm:$0xf0]  ;;  %v3779_v51 = vld [vmem:[#allocation3 + $0x160] sm:$0xff] }
  0x5d   :  { %997 = vmatpush.bf16.msra.mxu0 %v2745_v7  ;;  %1011 = vmatpush.bf16.msra.mxu1 %v2749_v8  ;;  %v2888_v7 = vld [vmem:[%s4754_s1 + $0x230] sm:$0xf] }
  0x5e   :  { %1025 = vmatpush.bf16.msra.mxu2 %v2753_v9  ;;  %v3685_v8 = vld [vmem:[%s4754_s1 + $0x26c] sm:$0xf0]  ;;  %v3677_v9 = vld [vmem:[%s4754_s1 + $0x234] sm:$0xf] }
  0x5f   :  { %1039 = vmatpush.bf16.msra.mxu3 %v2757_v13  ;;  %v3686_v13 = vld [vmem:[%s4754_s1 + $0x274] sm:$0xf0]  ;;  %v2889_v16 = vor.u32 %v3685_v8, %v2888_v7  ;;  %v2893_v17 = vor.u32 %v3677_v9, %v2890_v11  ;;  %v3741_v8 = vld [vmem:[#allocation3 + $0x30] sm:$0xff] }
  0x60   :  { %v2897_v18 = vor.u32 %v3686_v13, %v2896_v12  ;;  %v3758_v7 = vld [vmem:[#allocation3 + $0xb8] sm:$0xff]  ;;  %v3757_v11 = vld [vmem:[#allocation3 + $0xb0] sm:$0xff]  ;;  %v3740_v12 = vld [vmem:[#allocation3 + $0x28] sm:$0xff] }
  0x61   :  { %998 = vmatpush.bf16.msra.mxu0 %v2681_v19  ;;  %1012 = vmatpush.bf16.msra.mxu1 %v2685_v22  ;;  %v2824_v19 = vld [vmem:[%s4754_s1 + $0x1b0] sm:$0xf]  ;;  %v2901_v22 = vor.u32 %v3678_v14, %v2898_v15  ;;  %v3766_v9 = vld [vmem:[#allocation3 + $0xf8] sm:$0xff]  ;;  %v3748_v14 = vld [vmem:[#allocation3 + $0x68] sm:$0xff] }
  0x62   :  { %1026 = vmatpush.bf16.msra.mxu2 %v2689_v23  ;;  %v2826_v23 = vld [vmem:[%s4754_s1 + $0x1f0] sm:$0xf0]  ;;  %v2825_v28 = vor.u32 %v3669_v20, %v2824_v19  ;;  %v3756_v15 = vld [vmem:[#allocation3 + $0xa8] sm:$0xff]  ;;  %v3755_v19 = vld [vmem:[#allocation3 + $0xa0] sm:$0xff] }
  0x63   :  { %1040 = vmatpush.bf16.msra.mxu3 %v2693_v27  ;;  %v2834_v27 = vld [vmem:[%s4754_s1 + $0x1f8] sm:$0xf0]  ;;  %v2829_v29 = vor.u32 %v3661_v21, %v2826_v23  ;;  %v3765_v13 = vld [vmem:[#allocation3 + $0xf0] sm:$0xff]  ;;  %v3763_v20 = vld [vmem:[#allocation3 + $0xe0] sm:$0xff] }
  0x64   :  { %v3746_v21 = vld [vmem:[#allocation3 + $0x58] sm:$0xff]  ;;  %v3737_v23 = vld [vmem:[#allocation3 + $0x10] sm:$0xff] }
  0x65   :  { %999 = vmatpush.bf16.msra.mxu0 %v2617_v34  ;;  %1013 = vmatpush.bf16.msra.mxu1 %v2621_v38  ;;  %v2837_v34 = vor.u32 %v3662_v26, %v2834_v27  ;;  %v3646_v38 = vld [vmem:[%s4754_s1 + $0x13c] sm:$0xf]  ;;  %v3753_v26 = vld [vmem:[#allocation3 + $0x90] sm:$0xff]  ;;  %v3736_v27 = vld [vmem:[#allocation3 + $0x8] sm:$0xff] }
  0x66   :  { %1027 = vmatpush.bf16.msra.mxu2 %v2625_v39  ;;  %v2770_v39 = vld [vmem:[%s4754_s1 + $0x178] sm:$0xf0] }
  0x67   :  { %1041 = vmatpush.bf16.msra.mxu3 %v2629_v42  ;;  %v2769_v42 = vor.u32 %v3654_v37, %v2768_v36  ;;  %v2773_v46 = vor.u32 %v3646_v38, %v2770_v39  ;;  %v3751_v36 = vld [vmem:[#allocation3 + $0x80] sm:$0xff]  ;;  %v3790_v38 = vld [vmem:[#allocation3 + $0x1b8] sm:$0xff]  ;;  %v3773_v39 = vld [vmem:[#allocation3 + $0x130] sm:$0xff] }
  0x68   :  { %1000 = vmatmul.bf16.vlgmr.msra.gmra.mxu0 %v4172_v52  ;;  %1014 = vmatmul.bf16.vlgmr.msra.gmra.mxu1 %v4172_v52  ;;  %v3759_v37 = vld [vmem:[#allocation3 + $0xc0] sm:$0xff] }
  0x69   :  { %1048 = vmatpush.bf16.msrb.mxu0 %v3081_v43  ;;  %1062 = vmatpush.bf16.msrb.mxu1 %v3085_v44  ;;  %v2696_v43 = vld [vmem:[%s4754_s1 + $0xb0] sm:$0xf] }
  0x6a   :  { %1076 = vmatpush.bf16.msrb.mxu2 %v3089_v45  ;;  %1042 = vmatmul.bf16.vlgmr.msra.gmra.mxu3 %v4172_v52  ;;  %v3637_v44 = vld [vmem:[%s4754_s1 + $0xec] sm:$0xf0]  ;;  %v3629_v45 = vld [vmem:[%s4754_s1 + $0xb4] sm:$0xf] }
  0x6b   :  { %1090 = vmatpush.bf16.msrb.mxu3 %v3093_v49  ;;  %1028 = vmatmul.bf16.vlgmr.msra.gmra.mxu2 %v4172_v52  ;;  %v3638_v49 = vld [vmem:[%s4754_s1 + $0xf4] sm:$0xf0]  ;;  %v2697_v53 = vor.u32 %v3637_v44, %v2696_v43  ;;  %v2701_v54 = vor.u32 %v3629_v45, %v2698_v47  ;;  %v3772_v43 = vld [vmem:[#allocation3 + $0x128] sm:$0xff]  ;;  %v3797_v44 = vld [vmem:[#allocation3 + $0x1f0] sm:$0xff] }
  0x6c   :  { %v2705_v55 = vor.u32 %v3638_v49, %v2704_v48  ;;  %v3780_v45 = vld [vmem:[#allocation3 + $0x168] sm:$0xff]  ;;  %v3771_v48 = vld [vmem:[#allocation3 + $0x120] sm:$0xff] }
  0x6d   :  { %1049 = vmatpush.bf16.msrb.mxu0 %v3017_v56  ;;  %1063 = vmatpush.bf16.msrb.mxu1 %v3021_v57  ;;  %v2632_v56 = vld [vmem:[%s4754_s1 + $0x30] sm:$0xf]  ;;  %v3788_v47 = vld [vmem:[#allocation3 + $0x1a8] sm:$0xff] }
  0x6e   :  { %1077 = vmatpush.bf16.msrb.mxu2 %v3025_v58  ;;  %v3621_v57 = vld [vmem:[%s4754_s1 + $0x6c] sm:$0xf0]  ;;  %v3613_v58 = vld [vmem:[%s4754_s1 + $0x34] sm:$0xf]  ;;  %v3796_v49 = vld [vmem:[#allocation3 + $0x1e8] sm:$0xff] }
  0x6f   :  { %1091 = vmatpush.bf16.msrb.mxu3 %v3029_v62  ;;  %v3622_v62 = vld [vmem:[%s4754_s1 + $0x74] sm:$0xf0]  ;;  %v2633_v1 = vor.u32 %v3621_v57, %v2632_v56  ;;  %v2637_v2 = vor.u32 %v3613_v58, %v2634_v60  ;;  %v3787_v56 = vld [vmem:[#allocation3 + $0x1a0] sm:$0xff] }
  0x70   :  { %v2641_v3 = vor.u32 %v3622_v62, %v2640_v61  ;;  %v3770_v57 = vld [vmem:[#allocation3 + $0x118] sm:$0xff]  ;;  %v3795_v58 = vld [vmem:[#allocation3 + $0x1e0] sm:$0xff] }
  0x71   :  { %1050 = vmatpush.bf16.msrb.mxu0 %v2953_v4  ;;  %1064 = vmatpush.bf16.msrb.mxu1 %v2957_v5  ;;  %v2645_v4 = vor.u32 %v3614_v63, %v2642_v0  ;;  %v3742_v5 = vld [vmem:[#allocation3 + $0x38] sm:$0xff] }
  0x72   :  { %1078 = vmatpush.bf16.msrb.mxu2 %v2961_v6  ;;  %v3750_v6 = vld [vmem:[#allocation3 + $0x78] sm:$0xff] }
  0x73   :  { %1092 = vmatpush.bf16.msrb.mxu3 %v2965_v10  ;;  %v3749_v10 = vld [vmem:[#allocation3 + $0x70] sm:$0xff] }
  0x75   :  { %1051 = vmatpush.bf16.msrb.mxu0 %v2889_v16  ;;  %1065 = vmatpush.bf16.msrb.mxu1 %v2893_v17  ;;  %v3739_v16 = vld [vmem:[#allocation3 + $0x20] sm:$0xff]  ;;  %v3764_v17 = vld [vmem:[#allocation3 + $0xe8] sm:$0xff] }
  0x76   :  { %1079 = vmatpush.bf16.msrb.mxu2 %v2897_v18  ;;  %v3747_v18 = vld [vmem:[#allocation3 + $0x60] sm:$0xff] }
  0x77   :  { %1093 = vmatpush.bf16.msrb.mxu3 %v2901_v22  ;;  %v3754_v22 = vld [vmem:[#allocation3 + $0x98] sm:$0xff] }
  0x79   :  { %1052 = vmatpush.bf16.msrb.mxu0 %v2825_v28  ;;  %1066 = vmatpush.bf16.msrb.mxu1 %v2829_v29  ;;  %v3761_v28 = vld [vmem:[#allocation3 + $0xd0] sm:$0xff]  ;;  %v3744_v29 = vld [vmem:[#allocation3 + $0x48] sm:$0xff] }
  0x7a   :  { %1080 = vmatpush.bf16.msrb.mxu2 %v2833_v30  ;;  %v3752_v30 = vld [vmem:[#allocation3 + $0x88] sm:$0xff] }
  0x7b   :  { %1094 = vmatpush.bf16.msrb.mxu3 %v2837_v34  ;;  %v3774_v34 = vld [vmem:[#allocation3 + $0x138] sm:$0xff] }
  0x7d   :  { %1053 = vmatpush.bf16.msrb.mxu0 %v2761_v40  ;;  %1067 = vmatpush.bf16.msrb.mxu1 %v2765_v41  ;;  %v3798_v40 = vld [vmem:[#allocation3 + $0x1f8] sm:$0xff]  ;;  %v3781_v41 = vld [vmem:[#allocation3 + $0x170] sm:$0xff] }
  0x7e   :  { %1081 = vmatpush.bf16.msrb.mxu2 %v2769_v42  ;;  %v3789_v42 = vld [vmem:[#allocation3 + $0x1b0] sm:$0xff] }
  0x7f   :  { %1095 = vmatpush.bf16.msrb.mxu3 %v2773_v46  ;;  %v4721_v46 = vld [vmem:[%s4755_s2] sm:$0xff] }
  0x80   :  { %v1209_v63 = vperm.slane %v4721_v46, 2 }
  0x81   :  { %1054 = vmatpush.bf16.msrb.mxu0 %v2697_v53  ;;  %1068 = vmatpush.bf16.msrb.mxu1 %v2701_v54  ;;  %v1207_v53 = vperm.slane %v4721_v46, 0 }
  0x82   :  { %1082 = vmatpush.bf16.msrb.mxu2 %v2705_v55  ;;  %v1208_v55 = vperm.slane %v4721_v46, 1 }
  0x83   :  { %1096 = vmatpush.bf16.msrb.mxu3 %v2709_v59  ;;  %v3778_v59 = vld [vmem:[#allocation3 + $0x158] sm:$0xff] }
  0x85   :  { %1055 = vmatpush.bf16.msrb.mxu0 %v2633_v1  ;;  %1069 = vmatpush.bf16.msrb.mxu1 %v2637_v2  ;;  %v3786_v1 = vld [vmem:[#allocation3 + $0x198] sm:$0xff]  ;;  %v1210_v2 = vperm.slane %v4721_v46, 3 }
  0x86   :  { %1083 = vmatpush.bf16.msrb.mxu2 %v2641_v3  ;;  %v3769_v3 = vld [vmem:[#allocation3 + $0x110] sm:$0xff] }
  0x87   :  { %1097 = vmatpush.bf16.msrb.mxu3 %v2645_v4  ;;  %v3794_v4 = vld [vmem:[#allocation3 + $0x1d8] sm:$0xff] }
  0x88   :  { %1056 = vmatmul.bf16.vlgmr.msrb.gmra.mxu0 %v4172_v52  ;;  %1070 = vmatmul.bf16.vlgmr.msrb.gmra.mxu1 %v4172_v52 }
  0x89   :  { %2347 = vmatpush.bf16.msra.mxu0 %v3742_v5  ;;  %2361 = vmatpush.bf16.msra.mxu1 %v3750_v6  ;;  %v3777_v6 = vld [vmem:[#allocation3 + $0x150] sm:$0xff] }
  0x8a   :  { %1084 = vmatmul.bf16.vlgmr.msrb.gmra.mxu2 %v4172_v52  ;;  %1098 = vmatmul.bf16.vlgmr.msrb.gmra.mxu3 %v4172_v52  ;;  %v3738_v52 = vld [vmem:[#allocation3 + $0x18] sm:$0xff] }
  0x8b   :  { %2375 = vmatpush.bf16.msra.mxu2 %v3758_v7  ;;  %2389 = vmatpush.bf16.msra.mxu3 %v3766_v9 }
  0x8d   :  { %2348 = vmatpush.bf16.msra.mxu0 %v3741_v8  ;;  %2362 = vmatpush.bf16.msra.mxu1 %v3749_v10 }
  0x8f   :  { %2376 = vmatpush.bf16.msra.mxu2 %v3757_v11  ;;  %2390 = vmatpush.bf16.msra.mxu3 %v3765_v13  ;;  %v3785_v13 = vld [vmem:[#allocation3 + $0x190] sm:$0xff] }
  0x91   :  { %2349 = vmatpush.bf16.msra.mxu0 %v3740_v12  ;;  %2363 = vmatpush.bf16.msra.mxu1 %v3748_v14 }
  0x93   :  { %2377 = vmatpush.bf16.msra.mxu2 %v3756_v15  ;;  %2391 = vmatpush.bf16.msra.mxu3 %v3764_v17 }
  0x95   :  { %2350 = vmatpush.bf16.msra.mxu0 %v3739_v16  ;;  %2364 = vmatpush.bf16.msra.mxu1 %v3747_v18  ;;  %v3793_v16 = vld [vmem:[#allocation3 + $0x1d0] sm:$0xff]  ;;  %v3768_v18 = vld [vmem:[#allocation3 + $0x108] sm:$0xff] }
  0x97   :  { %2378 = vmatpush.bf16.msra.mxu2 %v3755_v19  ;;  %2392 = vmatpush.bf16.msra.mxu3 %v3763_v20  ;;  %v3776_v20 = vld [vmem:[#allocation3 + $0x148] sm:$0xff] }
  0x99   :  { %2351 = vmatpush.bf16.msra.mxu0 %v3738_v52  ;;  %2365 = vmatpush.bf16.msra.mxu1 %v3746_v21 }
  0x9b   :  { %2379 = vmatpush.bf16.msra.mxu2 %v3754_v22  ;;  %2393 = vmatpush.bf16.msra.mxu3 %v3762_v24 }
  0x9d   :  { %2352 = vmatpush.bf16.msra.mxu0 %v3737_v23  ;;  %2366 = vmatpush.bf16.msra.mxu1 %v3745_v25  ;;  %v3784_v25 = vld [vmem:[#allocation3 + $0x188] sm:$0xff] }
  0x9f   :  { %2380 = vmatpush.bf16.msra.mxu2 %v3753_v26  ;;  %2394 = vmatpush.bf16.msra.mxu3 %v3761_v28  ;;  %v3792_v28 = vld [vmem:[#allocation3 + $0x1c8] sm:$0xff] }
  0xa1   :  { %2353 = vmatpush.bf16.msra.mxu0 %v3736_v27  ;;  %2367 = vmatpush.bf16.msra.mxu1 %v3744_v29 }
  0xa3   :  { %2381 = vmatpush.bf16.msra.mxu2 %v3752_v30  ;;  %2395 = vmatpush.bf16.msra.mxu3 %v3760_v32  ;;  %v3767_v30 = vld [vmem:[#allocation3 + $0x100] sm:$0xff] }
  0xa4   :  { %v3775_v32 = vld [vmem:[#allocation3 + $0x140] sm:$0xff] }
  0xa5   :  { %2354 = vmatpush.bf16.msra.mxu0 %v3735_v31  ;;  %2368 = vmatpush.bf16.msra.mxu1 %v3743_v33  ;;  %v889_v50 = vpop.f32.mrf.mxu0  ;;  %v903_v54 = vpop.f32.mrf.mxu1 }
  0xa6   :  { %v1239_v60 = vadd.f32 %v1207_v53, %v889_v50  ;;  %v1240_v62 = vadd.f32 %v1208_v55, %v903_v54  ;;  %v3803_v54 = vld [vmem:[#allocation3 + $0x220] sm:$0xff] }
  0xa7   :  { %2382 = vmatpush.bf16.msra.mxu2 %v3751_v36  ;;  %2396 = vmatpush.bf16.msra.mxu3 %v3759_v37  ;;  %v3783_v37 = vld [vmem:[#allocation3 + $0x180] sm:$0xff] }
  0xa8   :  { %v1271_v7 = vmax.f32 %v1239_v60, 0.0  ;;  %v1272_v10 = vmax.f32 %v1240_v62, 0.0  ;;  %v3802_v60 = vld [vmem:[#allocation3 + $0x218] sm:$0xff] }
  0xa9   :  { %2403 = vmatpush.bf16.msrb.mxu0 %v3774_v34  ;;  %2417 = vmatpush.bf16.msrb.mxu1 %v3782_v35  ;;  %v3806_v34 = vld [vmem:[#allocation3 + $0x238] sm:$0xff] }
  0xaa   :  { %v3814_v35 = vld [vmem:[#allocation3 + $0x278] sm:$0xff] }
  0xab   :  { %2431 = vmatpush.bf16.msrb.mxu2 %v3790_v38  ;;  %2445 = vmatpush.bf16.msrb.mxu3 %v3798_v40  ;;  %v3791_v38 = vld [vmem:[#allocation3 + $0x1c0] sm:$0xff]  ;;  %v3830_v40 = vld [vmem:[#allocation3 + $0x2f8] sm:$0xff] }
  0xad   :  { %2404 = vmatpush.bf16.msrb.mxu0 %v3773_v39  ;;  %2418 = vmatpush.bf16.msrb.mxu1 %v3781_v41  ;;  %v931_v0 = vpop.f32.mrf.mxu3  ;;  %v891_v5 = vpop.f32.mrf.mxu0  ;;  %v3822_v39 = vld [vmem:[#allocation3 + $0x2b8] sm:$0xff]  ;;  %v3805_v41 = vld [vmem:[#allocation3 + $0x230] sm:$0xff] }
  0xae   :  { %v917_v61 = vpop.f32.mrf.mxu2  ;;  %v1255_v8 = vadd.f32 %v1207_v53, %v891_v5  ;;  %v905_v9 = vpop.f32.mrf.mxu1  ;;  %v1242_v14 = vadd.f32 %v1210_v2, %v931_v0  ;;  %v3818_v0 = vld [vmem:[#allocation3 + $0x298] sm:$0xff] }
  0xaf   :  { %2432 = vmatpush.bf16.msrb.mxu2 %v3789_v42  ;;  %2446 = vmatpush.bf16.msrb.mxu3 %v3797_v44  ;;  %v1241_v11 = vadd.f32 %v1209_v63, %v917_v61  ;;  %v1256_v12 = vadd.f32 %v1208_v55, %v905_v9  ;;  %v3813_v42 = vld [vmem:[#allocation3 + $0x270] sm:$0xff]  ;;  %v3811_v55 = vld [vmem:[#allocation3 + $0x260] sm:$0xff]  ;;  %v3810_v61 = vld [vmem:[#allocation3 + $0x258] sm:$0xff] }
  0xb0   :  { %v1287_v15 = vmax.f32 %v1255_v8, 0.0  ;;  %v1274_v26 = vmax.f32 %v1242_v14, 0.0  ;;  %v3829_v44 = vld [vmem:[#allocation3 + $0x2f0] sm:$0xff] }
  0xb1   :  { %2405 = vmatpush.bf16.msrb.mxu0 %v3772_v43  ;;  %2419 = vmatpush.bf16.msrb.mxu1 %v3780_v45  ;;  %v1288_v17 = vmax.f32 %v1256_v12, 0.0  ;;  %v1273_v21 = vmax.f32 %v1241_v11, 0.0  ;;  %v3821_v43 = vld [vmem:[#allocation3 + $0x2b0] sm:$0xff]  ;;  %v3804_v45 = vld [vmem:[#allocation3 + $0x228] sm:$0xff] }
  0xb2   :  { %v1303_v19 = vpack.c.bf16 %v1287_v15, %v1271_v7  ;;  %v1214_v7 = vperm.slane %v4721_v46, 7  ;;  %v3801_v9 = vld [vmem:[#allocation3 + $0x210] sm:$0xff] }
  0xb3   :  { %2433 = vmatpush.bf16.msrb.mxu2 %v3788_v47  ;;  %2447 = vmatpush.bf16.msrb.mxu3 %v3796_v49  ;;  %v1304_v22 = vpack.c.bf16 %v1288_v17, %v1272_v10  ;;  %v3812_v47 = vld [vmem:[#allocation3 + $0x268] sm:$0xff]  ;;  %v3809_v10 = vld [vmem:[#allocation3 + $0x250] sm:$0xff] }
  0xb4   :  { %2355 = vmatmul.bf16.vlgmr.msra.gmra.mxu0 %v1303_v19  ;;  %v3828_v49 = vld [vmem:[#allocation3 + $0x2e8] sm:$0xff]  ;;  %v3817_v14 = vld [vmem:[#allocation3 + $0x290] sm:$0xff] }
  0xb5   :  { %2406 = vmatpush.bf16.msrb.mxu0 %v3771_v48  ;;  %2420 = vmatpush.bf16.msrb.mxu1 %v3779_v51  ;;  %v933_v24 = vpop.f32.mrf.mxu3  ;;  %v3820_v48 = vld [vmem:[#allocation3 + $0x2a8] sm:$0xff]  ;;  %v1211_v51 = vperm.slane %v4721_v46, 4  ;;  %v3825_v17 = vld [vmem:[#allocation3 + $0x2d0] sm:$0xff] }
  0xb6   :  { %v919_v52 = vpop.f32.mrf.mxu2  ;;  %v1258_v27 = vadd.f32 %v1210_v2, %v933_v24  ;;  %2369 = vmatmul.bf16.vlgmr.msra.gmra.mxu1 %v1304_v22  ;;  %v1213_v2 = vperm.slane %v4721_v46, 6  ;;  %v3816_v22 = vld [vmem:[#allocation3 + $0x288] sm:$0xff] }
  0xb7   :  { %2434 = vmatpush.bf16.msrb.mxu2 %v3787_v56  ;;  %2448 = vmatpush.bf16.msrb.mxu3 %v3795_v58  ;;  %v1257_v23 = vadd.f32 %v1209_v63, %v919_v52  ;;  %v1212_v56 = vperm.slane %v4721_v46, 5  ;;  %v3827_v58 = vld [vmem:[#allocation3 + $0x2e0] sm:$0xff]  ;;  %v3800_v52 = vld [vmem:[#allocation3 + $0x208] sm:$0xff] }
  0xb8   :  { %v1290_v31 = vmax.f32 %v1258_v27, 0.0  ;;  %v3808_v46 = vld [vmem:[#allocation3 + $0x248] sm:$0xff] }
  0xb9   :  { %2407 = vmatpush.bf16.msrb.mxu0 %v3770_v57  ;;  %2421 = vmatpush.bf16.msrb.mxu1 %v3778_v59  ;;  %v1289_v29 = vmax.f32 %v1257_v23, 0.0  ;;  %v3819_v57 = vld [vmem:[#allocation3 + $0x2a0] sm:$0xff] }
  0xba   :  { %v1306_v36 = vpack.c.bf16 %v1290_v31, %v1274_v26  ;;  %v3824_v26 = vld [vmem:[#allocation3 + $0x2c8] sm:$0xff] }
  0xbb   :  { %2435 = vmatpush.bf16.msrb.mxu2 %v3786_v1  ;;  %2449 = vmatpush.bf16.msrb.mxu3 %v3794_v4  ;;  %v1305_v33 = vpack.c.bf16 %v1289_v29, %v1273_v21  ;;  %v3826_v1 = vld [vmem:[#allocation3 + $0x2d8] sm:$0xff]  ;;  %v3799_v29 = vld [vmem:[#allocation3 + $0x200] sm:$0xff] }
  0xbc   :  { %2397 = vmatmul.bf16.vlgmr.msra.gmra.mxu3 %v1306_v36  ;;  %v3815_v36 = vld [vmem:[#allocation3 + $0x280] sm:$0xff] }
  0xbd   :  { %2408 = vmatpush.bf16.msrb.mxu0 %v3769_v3  ;;  %2422 = vmatpush.bf16.msrb.mxu1 %v3777_v6 }
  0xbe   :  { %2383 = vmatmul.bf16.vlgmr.msra.gmra.mxu2 %v1305_v33 }
  0xbf   :  { %2436 = vmatpush.bf16.msrb.mxu2 %v3785_v13  ;;  %2450 = vmatpush.bf16.msrb.mxu3 %v3793_v16 }
  0xc1   :  { %2409 = vmatpush.bf16.msrb.mxu0 %v3768_v18  ;;  %2423 = vmatpush.bf16.msrb.mxu1 %v3776_v20 }
  0xc3   :  { %2437 = vmatpush.bf16.msrb.mxu2 %v3784_v25  ;;  %2451 = vmatpush.bf16.msrb.mxu3 %v3792_v28 }
  0xc5   :  { %2410 = vmatpush.bf16.msrb.mxu0 %v3767_v30  ;;  %2424 = vmatpush.bf16.msrb.mxu1 %v3775_v32  ;;  %v945_v50 = vpop.f32.mrf.mxu0  ;;  %v959_v53 = vpop.f32.mrf.mxu1  ;;  %v3807_v30 = vld [vmem:[#allocation3 + $0x240] sm:$0xff]  ;;  %v3838_v32 = vld [vmem:[#allocation3 + $0x338] sm:$0xff] }
  0xc6   :  { %v1243_v59 = vadd.f32 %v1211_v51, %v945_v50  ;;  %v1244_v62 = vadd.f32 %v1212_v56, %v959_v53  ;;  %v3860_v50 = vld [vmem:[#allocation3 + $0x3e8] sm:$0xff]  ;;  %v3835_v53 = vld [vmem:[#allocation3 + $0x320] sm:$0xff] }
  0xc7   :  { %2438 = vmatpush.bf16.msrb.mxu2 %v3783_v37  ;;  %2452 = vmatpush.bf16.msrb.mxu3 %v3791_v38  ;;  %v3823_v37 = vld [vmem:[#allocation3 + $0x2c0] sm:$0xff] }
  0xc8   :  { %v1275_v5 = vmax.f32 %v1243_v59, 0.0  ;;  %v1276_v11 = vmax.f32 %v1244_v62, 0.0  ;;  %v3859_v59 = vld [vmem:[#allocation3 + $0x3e0] sm:$0xff]  ;;  %v3842_v62 = vld [vmem:[#allocation3 + $0x358] sm:$0xff] }
  0xc9   :  { %2459 = vmatpush.bf16.msra.mxu0 %v3806_v34  ;;  %2473 = vmatpush.bf16.msra.mxu1 %v3814_v35  ;;  %v3846_v34 = vld [vmem:[#allocation3 + $0x378] sm:$0xff] }
  0xcb   :  { %2487 = vmatpush.bf16.msra.mxu2 %v3822_v39  ;;  %2501 = vmatpush.bf16.msra.mxu3 %v3830_v40  ;;  %v3854_v39 = vld [vmem:[#allocation3 + $0x3b8] sm:$0xff] }
  0xcc   :  { %v3862_v40 = vld [vmem:[#allocation3 + $0x3f8] sm:$0xff] }
  0xcd   :  { %2460 = vmatpush.bf16.msra.mxu0 %v3805_v41  ;;  %2474 = vmatpush.bf16.msra.mxu1 %v3813_v42  ;;  %v947_v3 = vpop.f32.mrf.mxu0  ;;  %v987_v4 = vpop.f32.mrf.mxu3  ;;  %v3837_v41 = vld [vmem:[#allocation3 + $0x330] sm:$0xff] }
  0xce   :  { %v973_v63 = vpop.f32.mrf.mxu2  ;;  %v1259_v6 = vadd.f32 %v1211_v51, %v947_v3  ;;  %v961_v8 = vpop.f32.mrf.mxu1  ;;  %v1246_v19 = vadd.f32 %v1214_v7, %v987_v4  ;;  %v3845_v42 = vld [vmem:[#allocation3 + $0x370] sm:$0xff]  ;;  %v3858_v3 = vld [vmem:[#allocation3 + $0x3d8] sm:$0xff] }
  0xcf   :  { %2488 = vmatpush.bf16.msra.mxu2 %v3821_v43  ;;  %2502 = vmatpush.bf16.msra.mxu3 %v3829_v44  ;;  %v1260_v12 = vadd.f32 %v1212_v56, %v961_v8  ;;  %v1245_v15 = vadd.f32 %v1213_v2, %v973_v63  ;;  %v3853_v43 = vld [vmem:[#allocation3 + $0x3b0] sm:$0xff] }
  0xd0   :  { %v1291_v13 = vmax.f32 %v1259_v6, 0.0  ;;  %v1278_v27 = vmax.f32 %v1246_v19, 0.0  ;;  %v3861_v44 = vld [vmem:[#allocation3 + $0x3f0] sm:$0xff] }
  0xd1   :  { %2461 = vmatpush.bf16.msra.mxu0 %v3804_v45  ;;  %2475 = vmatpush.bf16.msra.mxu1 %v3812_v47  ;;  %v1292_v16 = vmax.f32 %v1260_v12, 0.0  ;;  %v1277_v23 = vmax.f32 %v1245_v15, 0.0  ;;  %v3836_v45 = vld [vmem:[#allocation3 + $0x328] sm:$0xff]  ;;  %v3849_v15 = vld [vmem:[#allocation3 + $0x390] sm:$0xff] }
  0xd2   :  { %v1307_v18 = vpack.c.bf16 %v1291_v13, %v1275_v5  ;;  %v3844_v47 = vld [vmem:[#allocation3 + $0x368] sm:$0xff]  ;;  %v3857_v19 = vld [vmem:[#allocation3 + $0x3d0] sm:$0xff] }
  0xd3   :  { %2489 = vmatpush.bf16.msra.mxu2 %v3820_v48  ;;  %2503 = vmatpush.bf16.msra.mxu3 %v3828_v49  ;;  %v1308_v20 = vpack.c.bf16 %v1292_v16, %v1276_v11  ;;  %v4734_v48 = vld [vmem:[%s4755_s2 + $0x8] sm:$0xff] }
  0xd4   :  { %2411 = vmatmul.bf16.vlgmr.msrb.gmra.mxu0 %v1307_v18  ;;  %v3852_v49 = vld [vmem:[#allocation3 + $0x3a8] sm:$0xff]  ;;  %v1217_v4 = vperm.slane %v4734_v48, 2  ;;  %v1218_v5 = vperm.slane %v4734_v48, 3 }
  0xd5   :  { %2462 = vmatpush.bf16.msra.mxu0 %v3803_v54  ;;  %2476 = vmatpush.bf16.msra.mxu1 %v3811_v55  ;;  %v989_v25 = vpop.f32.mrf.mxu3  ;;  %v1215_v54 = vperm.slane %v4734_v48, 0  ;;  %v3843_v55 = vld [vmem:[#allocation3 + $0x360] sm:$0xff]  ;;  %v3832_v18 = vld [vmem:[#allocation3 + $0x308] sm:$0xff] }
  0xd6   :  { %v975_v21 = vpop.f32.mrf.mxu2  ;;  %2425 = vmatmul.bf16.vlgmr.msrb.gmra.mxu1 %v1308_v20  ;;  %v1262_v28 = vadd.f32 %v1214_v7, %v989_v25  ;;  %v3833_v7 = vld [vmem:[#allocation3 + $0x310] sm:$0xff]  ;;  %v3840_v20 = vld [vmem:[#allocation3 + $0x348] sm:$0xff] }
  0xd7   :  { %2490 = vmatpush.bf16.msra.mxu2 %v3819_v57  ;;  %2504 = vmatpush.bf16.msra.mxu3 %v3827_v58  ;;  %v1261_v24 = vadd.f32 %v1213_v2, %v975_v21  ;;  %v1216_v57 = vperm.slane %v4734_v48, 1  ;;  %v3851_v58 = vld [vmem:[#allocation3 + $0x3a0] sm:$0xff]  ;;  %v3850_v2 = vld [vmem:[#allocation3 + $0x398] sm:$0xff] }
  0xd8   :  { %v1294_v33 = vmax.f32 %v1262_v28, 0.0 }
  0xd9   :  { %2463 = vmatpush.bf16.msra.mxu0 %v3802_v60  ;;  %2477 = vmatpush.bf16.msra.mxu1 %v3810_v61  ;;  %v1293_v31 = vmax.f32 %v1261_v24, 0.0  ;;  %v3834_v60 = vld [vmem:[#allocation3 + $0x318] sm:$0xff]  ;;  %v3848_v24 = vld [vmem:[#allocation3 + $0x388] sm:$0xff] }
  0xda   :  { %v1310_v38 = vpack.c.bf16 %v1294_v33, %v1278_v27  ;;  %v3839_v33 = vld [vmem:[#allocation3 + $0x340] sm:$0xff] }
  0xdb   :  { %2491 = vmatpush.bf16.msra.mxu2 %v3818_v0  ;;  %2505 = vmatpush.bf16.msra.mxu3 %v3826_v1  ;;  %v1309_v35 = vpack.c.bf16 %v1293_v31, %v1277_v23 }
  0xdc   :  { %2453 = vmatmul.bf16.vlgmr.msrb.gmra.mxu3 %v1310_v38 }
  0xdd   :  { %2464 = vmatpush.bf16.msra.mxu0 %v3801_v9  ;;  %2478 = vmatpush.bf16.msra.mxu1 %v3809_v10  ;;  %v3841_v10 = vld [vmem:[#allocation3 + $0x350] sm:$0xff] }
  0xde   :  { %2439 = vmatmul.bf16.vlgmr.msrb.gmra.mxu2 %v1309_v35 }
  0xdf   :  { %2492 = vmatpush.bf16.msra.mxu2 %v3817_v14  ;;  %2506 = vmatpush.bf16.msra.mxu3 %v3825_v17 }
  0xe1   :  { %2465 = vmatpush.bf16.msra.mxu0 %v3800_v52  ;;  %2479 = vmatpush.bf16.msra.mxu1 %v3808_v46 }
  0xe3   :  { %2493 = vmatpush.bf16.msra.mxu2 %v3816_v22  ;;  %2507 = vmatpush.bf16.msra.mxu3 %v3824_v26 }
  0xe5   :  { %2466 = vmatpush.bf16.msra.mxu0 %v3799_v29  ;;  %2480 = vmatpush.bf16.msra.mxu1 %v3807_v30  ;;  %v1001_v51 = vpop.f32.mrf.mxu0  ;;  %v1015_v56 = vpop.f32.mrf.mxu1  ;;  %v3831_v29 = vld [vmem:[#allocation3 + $0x300] sm:$0xff]  ;;  %v3856_v30 = vld [vmem:[#allocation3 + $0x3c8] sm:$0xff] }
  0xe6   :  { %v1247_v61 = vadd.f32 %v1215_v54, %v1001_v51  ;;  %v1248_v63 = vadd.f32 %v1216_v57, %v1015_v56  ;;  %v1222_v56 = vperm.slane %v4734_v48, 7 }
  0xe7   :  { %2494 = vmatpush.bf16.msra.mxu2 %v3815_v36  ;;  %2508 = vmatpush.bf16.msra.mxu3 %v3823_v37  ;;  %v3855_v37 = vld [vmem:[#allocation3 + $0x3c0] sm:$0xff] }
  0xe8   :  { %v1279_v8 = vmax.f32 %v1247_v61, 0.0  ;;  %v1280_v12 = vmax.f32 %v1248_v63, 0.0 }
  0xe9   :  { %2515 = vmatpush.bf16.msrb.mxu0 %v3838_v32  ;;  %2529 = vmatpush.bf16.msrb.mxu1 %v3846_v34  ;;  %v3847_v34 = vld [vmem:[#allocation3 + $0x380] sm:$0xff] }
  0xeb   :  { %2543 = vmatpush.bf16.msrb.mxu2 %v3854_v39  ;;  %2557 = vmatpush.bf16.msrb.mxu3 %v3862_v40  ;;  %v1219_v39 = vperm.slane %v4734_v48, 4 }
  0xed   :  { %2516 = vmatpush.bf16.msrb.mxu0 %v3837_v41  ;;  %2530 = vmatpush.bf16.msrb.mxu1 %v3845_v42  ;;  %v1043_v1 = vpop.f32.mrf.mxu3  ;;  %v1003_v6 = vpop.f32.mrf.mxu0  ;;  %v1220_v41 = vperm.slane %v4734_v48, 5 }
  0xee   :  { %v1029_v0 = vpop.f32.mrf.mxu2  ;;  %v1263_v9 = vadd.f32 %v1215_v54, %v1003_v6  ;;  %v1017_v11 = vpop.f32.mrf.mxu1  ;;  %v1250_v17 = vadd.f32 %v1218_v5, %v1043_v1  ;;  %v1221_v54 = vperm.slane %v4734_v48, 6 }
  0xef   :  { %2544 = vmatpush.bf16.msrb.mxu2 %v3853_v43  ;;  %2558 = vmatpush.bf16.msrb.mxu3 %v3861_v44  ;;  %v1264_v14 = vadd.f32 %v1216_v57, %v1017_v11  ;;  %v1249_v16 = vadd.f32 %v1217_v4, %v1029_v0 }
  0xf0   :  { %v1295_v13 = vmax.f32 %v1263_v9, 0.0  ;;  %v1282_v26 = vmax.f32 %v1250_v17, 0.0 }
  0xf1   :  { %2517 = vmatpush.bf16.msrb.mxu0 %v3836_v45  ;;  %2531 = vmatpush.bf16.msrb.mxu1 %v3844_v47  ;;  %v1296_v46 = vmax.f32 %v1264_v14, 0.0  ;;  %v1281_v25 = vmax.f32 %v1249_v16, 0.0  ;;  %v3866_v14 = vld [vmem:[%s4757_s4] ss:$0 sm:$0xff] }
  0xf2   :  { %v1311_v52 = vpack.c.bf16 %v1295_v13, %v1279_v8 }
  0xf3   :  { %2545 = vmatpush.bf16.msrb.mxu2 %v3852_v49  ;;  %2559 = vmatpush.bf16.msrb.mxu3 %v3860_v50  ;;  %v1312_v21 = vpack.c.bf16 %v1296_v46, %v1280_v12 }
  0xf4   :  { %2467 = vmatmul.bf16.vlgmr.msra.gmra.mxu0 %v1311_v52 }
  0xf5   :  { %2518 = vmatpush.bf16.msrb.mxu0 %v3835_v53  ;;  %2532 = vmatpush.bf16.msrb.mxu1 %v3843_v55  ;;  %v1045_v23 = vpop.f32.mrf.mxu3 }
  0xf6   :  { %v1031_v22 = vpop.f32.mrf.mxu2  ;;  %v1266_v28 = vadd.f32 %v1218_v5, %v1045_v23  ;;  %2481 = vmatmul.bf16.vlgmr.msra.gmra.mxu1 %v1312_v21 }
  0xf7   :  { %2546 = vmatpush.bf16.msrb.mxu2 %v3851_v58  ;;  %2560 = vmatpush.bf16.msrb.mxu3 %v3859_v59  ;;  %v1265_v27 = vadd.f32 %v1217_v4, %v1031_v22 }
  0xf8   :  { %v1298_v32 = vmax.f32 %v1266_v28, 0.0 }
  0xf9   :  { %2519 = vmatpush.bf16.msrb.mxu0 %v3834_v60  ;;  %2533 = vmatpush.bf16.msrb.mxu1 %v3842_v62  ;;  %v1297_v31 = vmax.f32 %v1265_v27, 0.0 }
  0xfa   :  { %v1314_v36 = vpack.c.bf16 %v1298_v32, %v1282_v26 }
  0xfb   :  { %2547 = vmatpush.bf16.msrb.mxu2 %v3850_v2  ;;  %2561 = vmatpush.bf16.msrb.mxu3 %v3858_v3  ;;  %v1313_v35 = vpack.c.bf16 %v1297_v31, %v1281_v25 }
  0xfc   :  { %2509 = vmatmul.bf16.vlgmr.msra.gmra.mxu3 %v1314_v36 }
  0xfd   :  { %2520 = vmatpush.bf16.msrb.mxu0 %v3833_v7  ;;  %2534 = vmatpush.bf16.msrb.mxu1 %v3841_v10 }
  0xfe   :  { %2495 = vmatmul.bf16.vlgmr.msra.gmra.mxu2 %v1313_v35 }
  0xff   :  { %2548 = vmatpush.bf16.msrb.mxu2 %v3849_v15  ;;  %2562 = vmatpush.bf16.msrb.mxu3 %v3857_v19 }
 0x101   :  { %2521 = vmatpush.bf16.msrb.mxu0 %v3832_v18  ;;  %2535 = vmatpush.bf16.msrb.mxu1 %v3840_v20 }
 0x103   :  { %2549 = vmatpush.bf16.msrb.mxu2 %v3848_v24  ;;  %2563 = vmatpush.bf16.msrb.mxu3 %v3856_v30 }
 0x105   :  { %2522 = vmatpush.bf16.msrb.mxu0 %v3831_v29  ;;  %2536 = vmatpush.bf16.msrb.mxu1 %v3839_v33  ;;  %v1057_v38 = vpop.f32.mrf.mxu0  ;;  %v1071_v40 = vpop.f32.mrf.mxu1 }
 0x106   :  { %v1251_v42 = vadd.f32 %v1219_v39, %v1057_v38  ;;  %v1252_v43 = vadd.f32 %v1220_v41, %v1071_v40 }
 0x107   :  { %2550 = vmatpush.bf16.msrb.mxu2 %v3847_v34  ;;  %2564 = vmatpush.bf16.msrb.mxu3 %v3855_v37 }
 0x108   :  { %v1283_v49 = vmax.f32 %v1251_v42, 0.0  ;;  %v1284_v53 = vmax.f32 %v1252_v43, 0.0 }
 0x10d   :  { %v1085_v44 = vpop.f32.mrf.mxu2  ;;  %v1099_v45 = vpop.f32.mrf.mxu3 }
 0x10e   :  { %v1059_v47 = vpop.f32.mrf.mxu0  ;;  %v1073_v51 = vpop.f32.mrf.mxu1  ;;  %v1253_v60 = vadd.f32 %v1221_v54, %v1085_v44  ;;  %v1254_v62 = vadd.f32 %v1222_v56, %v1099_v45 }
 0x10f   :  { %v1267_v50 = vadd.f32 %v1219_v39, %v1059_v47  ;;  %v1268_v55 = vadd.f32 %v1220_v41, %v1073_v51 }
 0x110   :  { %v1285_v3 = vmax.f32 %v1253_v60, 0.0  ;;  %v1286_v5 = vmax.f32 %v1254_v62, 0.0 }
 0x111   :  { %v1299_v57 = vmax.f32 %v1267_v50, 0.0  ;;  %v1300_v58 = vmax.f32 %v1268_v55, 0.0 }
 0x113   :  { %v1315_v59 = vpack.c.bf16 %v1299_v57, %v1283_v49  ;;  %v1316_v61 = vpack.c.bf16 %v1300_v58, %v1284_v53 }
 0x115   :  { %v1087_v63 = vpop.f32.mrf.mxu2  ;;  %2523 = vmatmul.bf16.vlgmr.msrb.gmra.mxu0 %v1315_v59  ;;  %v1101_v1 = vpop.f32.mrf.mxu3  ;;  %2537 = vmatmul.bf16.vlgmr.msrb.gmra.mxu1 %v1316_v61 }
 0x116   :  { %v1269_v0 = vadd.f32 %v1221_v54, %v1087_v63  ;;  %v1270_v2 = vadd.f32 %v1222_v56, %v1101_v1 }
 0x118   :  { %v1301_v4 = vmax.f32 %v1269_v0, 0.0  ;;  %v1302_v6 = vmax.f32 %v1270_v2, 0.0 }
 0x11a   :  { %v1317_v7 = vpack.c.bf16 %v1301_v4, %v1285_v3  ;;  %v1318_v8 = vpack.c.bf16 %v1302_v6, %v1286_v5 }
 0x11c   :  { %2551 = vmatmul.bf16.vlgmr.msrb.gmra.mxu2 %v1317_v7  ;;  %2565 = vmatmul.bf16.vlgmr.msrb.gmra.mxu3 %v1318_v8 }
 0x131   :  { %v2356_v48 = vpop.f32.mrf.mxu0 }
 0x132   :  { %v2357_v16 = vadd.f32 %v3866_v14, %v2356_v48 }
 0x133   :  { %v2370_v9 = vpop.f32.mrf.mxu1 }
 0x134   :  { %v2371_v19 = vadd.f32 %v2370_v9, %v2357_v16 }
 0x139   :  { %v2358_v10 = vpop.f32.mrf.mxu0 }
 0x13a   :  { %v2359_v22 = vadd.f32 %v3866_v14, %v2358_v10 }
 0x13b   :  { %v2372_v13 = vpop.f32.mrf.mxu1 }
 0x13c   :  { %v2373_v25 = vadd.f32 %v2372_v13, %v2359_v22 }
 0x13f   :  { %v2398_v12 = vpop.f32.mrf.mxu3 }
 0x141   :  { %v2384_v11 = vpop.f32.mrf.mxu2 }
 0x142   :  { %v2385_v46 = vadd.f32 %v2384_v11, %v2371_v19 }
 0x144   :  { %v2399_v24 = vadd.f32 %v2398_v12, %v2385_v46 }
 0x147   :  { %v2400_v18 = vpop.f32.mrf.mxu3 }
 0x149   :  { %v2386_v17 = vpop.f32.mrf.mxu2 }
 0x14a   :  { %v2387_v29 = vadd.f32 %v2386_v17, %v2373_v25 }
 0x14c   :  { %v2401_v33 = vadd.f32 %v2400_v18, %v2387_v29 }
 0x151   :  { %v2412_v15 = vpop.f32.mrf.mxu0 }
 0x152   :  { %v2413_v27 = vadd.f32 %v2412_v15, %v2399_v24 }
 0x153   :  { %v2426_v52 = vpop.f32.mrf.mxu1 }
 0x154   :  { %v2427_v31 = vadd.f32 %v2426_v52, %v2413_v27 }
 0x159   :  { %v2414_v20 = vpop.f32.mrf.mxu0 }
 0x15a   :  { %v2415_v36 = vadd.f32 %v2414_v20, %v2401_v33 }
 0x15b   :  { %v2428_v26 = vpop.f32.mrf.mxu1 }
 0x15c   :  { %v2429_v40 = vadd.f32 %v2428_v26, %v2415_v36 }
 0x15f   :  { %v2454_v23 = vpop.f32.mrf.mxu3 }
 0x161   :  { %v2440_v21 = vpop.f32.mrf.mxu2 }
 0x162   :  { %v2441_v34 = vadd.f32 %v2440_v21, %v2427_v31 }
 0x164   :  { %v2455_v37 = vadd.f32 %v2454_v23, %v2441_v34 }
 0x167   :  { %v2456_v32 = vpop.f32.mrf.mxu3 }
 0x169   :  { %v2442_v30 = vpop.f32.mrf.mxu2 }
 0x16a   :  { %v2443_v43 = vadd.f32 %v2442_v30, %v2429_v40 }
 0x16c   :  { %v2457_v47 = vadd.f32 %v2456_v32, %v2443_v43 }
 0x171   :  { %v2468_v28 = vpop.f32.mrf.mxu0 }
 0x172   :  { %v2469_v41 = vadd.f32 %v2468_v28, %v2455_v37 }
 0x173   :  { %v2482_v35 = vpop.f32.mrf.mxu1 }
 0x174   :  { %v2483_v44 = vadd.f32 %v2482_v35, %v2469_v41 }
 0x179   :  { %v2470_v38 = vpop.f32.mrf.mxu0 }
 0x17a   :  { %v2471_v51 = vadd.f32 %v2470_v38, %v2457_v47 }
 0x17b   :  { %v2484_v45 = vpop.f32.mrf.mxu1 }
 0x17c   :  { %v2485_v56 = vadd.f32 %v2484_v45, %v2471_v51 }
 0x17f   :  { %v2510_v42 = vpop.f32.mrf.mxu3 }
 0x181   :  { %v2496_v39 = vpop.f32.mrf.mxu2 }
 0x182   :  { %v2497_v49 = vadd.f32 %v2496_v39, %v2483_v44 }
 0x184   :  { %v2511_v54 = vadd.f32 %v2510_v42, %v2497_v49 }
 0x187   :  { %v2512_v55 = vpop.f32.mrf.mxu3 }
 0x189   :  { %v2498_v53 = vpop.f32.mrf.mxu2 }
 0x18a   :  { %v2499_v59 = vadd.f32 %v2498_v53, %v2485_v56 }
 0x18c   :  { %v2513_v63 = vadd.f32 %v2512_v55, %v2499_v59 }
 0x192   :  { %v2524_v50 = vpop.f32.mrf.mxu0  ;;  %v2538_v58 = vpop.f32.mrf.mxu1 }
 0x193   :  { %v2525_v57 = vadd.f32 %v2524_v50, %v2511_v54 }
 0x195   :  { %v2539_v60 = vadd.f32 %v2538_v58, %v2525_v57 }
 0x19a   :  { %v2526_v61 = vpop.f32.mrf.mxu0  ;;  %v2540_v4 = vpop.f32.mrf.mxu1 }
 0x19b   :  { %v2527_v2 = vadd.f32 %v2526_v61, %v2513_v63 }
 0x19d   :  { %v2541_v5 = vadd.f32 %v2540_v4, %v2527_v2 }
 0x19f   :  { %v2552_v62 = vpop.f32.mrf.mxu2  ;;  %v2566_v1 = vpop.f32.mrf.mxu3 }
 0x1a0   :  { %v2553_v0 = vadd.f32 %v2552_v62, %v2539_v60 }
 0x1a2   :  { %v2567_v3 = vadd.f32 %v2566_v1, %v2553_v0 }
 0x1a4   :  { %2571 = vst [vmem:[%s4758_s5] sm:$0xff] %v2567_v3 }
 0x1a7   :  { %v2554_v6 = vpop.f32.mrf.mxu2  ;;  %v2568_v8 = vpop.f32.mrf.mxu3 }
 0x1a8   :  { %v2555_v7 = vadd.f32 %v2554_v6, %v2541_v5 }
 0x1aa   :  { %v2569_v48 = vadd.f32 %v2568_v8, %v2555_v7 }
 0x1ac   :  { %2572 = vst [vmem:[%s4758_s5 + $0x8] sm:$0xff] %v2569_v48 }
 0x1ad   :  { %2577 = vsyncpa [#allocation4], 1 }

</bundles_post_ra>
